<compile_context>
chip_gen: v6e
topology: v6e:2x2x1
jax: 0.10.0
libtpu: 0.0.40
codegen_flags: <defaults>
</compile_context>

<pallas_src>
import jax
import jax.numpy as jnp
from jax.experimental import pallas as pl
from jax.experimental.pallas import tpu as pltpu

STABILITY = 0.999999
_ROW_CANDIDATES = (512, 256, 128, 64, 32, 16, 8)   # rows of 128 voxels
_VMEM_IO_BUDGET = 16 * 1024 * 1024                 # double-buffered input bytes


def _cdiv(a, b):
    return -(-a // b)


def _num_tensorcores():
    """Best-effort TensorCore count (2 on v7x, 1 on v5e/v6e); 0 if unknown."""
    objs = []
    try:
        objs.append(pltpu.get_tpu_info())
    except Exception:
        pass
    try:
        devs = jax.devices()
        if devs:
            objs.append(devs[0])
    except Exception:
        pass
    for obj in objs:
        for name in ("num_cores", "core_count", "num_tensorcores",
                     "tensorcore_count"):
            v = getattr(obj, name, None)
            try:
                v = int(v)
            except (TypeError, ValueError):
                continue
            if 1 <= v <= 16:
                return v
    return 0


def _choose_tile_rows(R, bytes_per_row, min_rows):
    """Largest row tile whose double-buffered input footprint fits the VMEM
    budget.  Big tiles amortize the ~0.35us per-step pipeline overhead."""
    for tr in _ROW_CANDIDATES:
        if tr < min_rows or tr > R:
            continue
        if 2 * tr * bytes_per_row <= _VMEM_IO_BUDGET:
            return tr
    return R        # tiny problem: single full-extent tile (allowed block dim)


def _make_fused_kernel(T, C, P, tile_rows, n_inner, alphas):
    """refs = (x_0..x_{T-1}, t_0..t_{T-1}, w, out).

    x_h : (C, tile_rows, 128)  native dtype (upcast in-kernel)
    t_h : (1, tile_rows, 128)  int32, padded elements are -1
    w   : (1, tile_rows, 128)  f32, padded elements are 0
    out : (1, tile_rows, 128)  f32 resident partial-sum accumulator
    """
    stab2 = float(STABILITY) * float(STABILITY)

    def kernel(*refs):
        x_refs = refs[:T]
        t_refs = refs[T:2 * T]
        w_ref = refs[2 * T]
        out_ref = refs[2 * T + 1]

        o = pl.program_id(0)
        i = pl.program_id(1)

        @pl.when(i == 0)
        def _init():
            out_ref[...] = jnp.zeros_like(out_ref)

        # Element-level validity mask.  It discards (a) lane padding past P,
        # (b) the garbage rows of the partial last row-tile (OOB DMA contents
        # may be NaN) and (c) over-hanging logical tiles whose x block index
        # is clamped.  jnp.where (not multiply) so NaN garbage is dropped.
        row = jax.lax.broadcasted_iota(jnp.int32, (tile_rows, 128), 0)
        lane = jax.lax.broadcasted_iota(jnp.int32, (tile_rows, 128), 1)
        gpos = ((o * n_inner + i) * tile_rows + row) * 128 + lane
        valid = gpos < P

        w = w_ref[0]                                         # (rows, 128) f32

        acc = jnp.zeros((tile_rows, 128), jnp.float32)
        for h in range(T):
            lab = t_refs[h][0]                               # (rows, 128) i32
            sumsq = jnp.zeros((tile_rows, 128), jnp.float32)
            xsel = jnp.zeros((tile_rows, 128), jnp.float32)
            # C is small (e.g. 4): unrolled dense VPU adds / selects; no
            # (C, tile) one-hot temp, no cross-sublane reduce.
            for c in range(C):
                xc = x_refs[h][c].astype(jnp.float32)        # (rows, 128)
                sumsq = sumsq + xc * xc
                xsel = xsel + jnp.where(lab == c, xc, 0.0)
            # one-hot target has unit norm:
            #   cos = stab^2 * x[label] / max(||x||, 1e-8)
            inv = jax.lax.rsqrt(jnp.maximum(sumsq, 1e-16))   # EUP
            cos = stab2 * xsel * inv
            # acos(c) = 2*atan2(sqrt(1-c^2), 1+c); safe since |cos| < 1.
            err = 2.0 * jnp.arctan2(
                jnp.sqrt(jnp.maximum(1.0 - cos * cos, 0.0)), 1.0 + cos)
            acc = acc + jnp.float32(alphas[h]) * (err * err)

        out_ref[...] += jnp.where(valid, acc * w, 0.0)[None]

    return kernel


def _tags_angular_loss_fused(inputs, targets, alphas, weight=None):
    """Fused multi-head square angular loss. All heads must share one shape."""
    T = len(inputs)
    N, C, D, H, W = inputs[0].shape
    assert N == 1, "reference broadcast semantics only well-defined for N == 1"
    for inp, tgt in zip(inputs, targets):
        assert inp.shape == (N, C, D, H, W)
        assert tgt.shape == (N, D, H, W)
    P = N * D * H * W
    R = _cdiv(P, 128)                      # 128-voxel rows (sublane-dense view)

    # HBM bytes per row of 128 voxels, summed over all streams.
    x_bytes = sum(jnp.dtype(inp.dtype).itemsize for inp in inputs)
    bytes_per_row = 128 * (C * x_bytes + 4 * T + 4)
    min_rows = 16 if any(jnp.dtype(i.dtype).itemsize < 4 for i in inputs) else 8
    tile_rows = _choose_tile_rows(R, bytes_per_row, min_rows)

    n_tiles = _cdiv(R, tile_rows)
    cores = _num_tensorcores()
    if cores == 0:                          # unknown: only split when cheap
        cores = 2 if n_tiles >= 8 else 1
    n_outer = max(1, min(n_tiles, min(cores, 2)))   # megacore sharding (v7x)
    n_inner = _cdiv(n_tiles, n_outer)
    Rp = n_outer * n_inner * tile_rows      # logical (padded) row extent
    last_tile = n_tiles - 1

    # Big activations: native dtype, zero-copy (C, R, 128) view when P is a
    # multiple of 128; otherwise a single lane-pad copy (rare shapes only).
    xs = []
    for inp in inputs:
        x2d = inp.reshape(C, P)
        if R * 128 != P:
            x2d = jnp.pad(x2d, ((0, 0), (0, R * 128 - P)))
        xs.append(x2d.reshape(C, R, 128))

    # Cheap (1, Rp, 128) rows: padded so their blocks are always in-bounds.
    # Weight padding is 0 and label padding is -1 (never matches a class).
    def _row3d(v, dtype, fill):
        v = v.reshape(1, P).astype(dtype)
        v = jnp.pad(v, ((0, 0), (0, Rp * 128 - P)), constant_values=fill)
        return v.reshape(1, Rp, 128)

    ts = [_row3d(t, jnp.int32, -1) for t in targets]
    if weight is None:
        w3d = _row3d(jnp.ones((P,), jnp.float32), jnp.float32, 0.0)
    else:
        w3d = _row3d(weight, jnp.float32, 0.0)

    # x block indices are clamped so no fully-out-of-range block is requested;
    # the in-kernel validity mask zeroes any over-hanging contribution.
    def x_map(o, i):
        return (0, jnp.minimum(o * n_inner + i, last_tile), 0)

    def row_map(o, i):
        return (0, o * n_inner + i, 0)

    def out_map(o, i):
        return (o, 0, 0)

    in_specs = ([pl.BlockSpec((C, tile_rows, 128), x_map) for _ in range(T)]
                + [pl.BlockSpec((1, tile_rows, 128), row_map) for _ in range(T)]
                + [pl.BlockSpec((1, tile_rows, 128), row_map)])

    partials = pl.pallas_call(
        _make_fused_kernel(T, C, P, tile_rows, n_inner, alphas),
        out_shape=jax.ShapeDtypeStruct((n_outer, tile_rows, 128), jnp.float32),
        grid_spec=pltpu.PrefetchScalarGridSpec(
            num_scalar_prefetch=0,
            grid=(n_outer, n_inner),
            in_specs=in_specs,
            out_specs=pl.BlockSpec((1, tile_rows, 128), out_map),
        ),
        compiler_params=pltpu.CompilerParams(
            dimension_semantics=("parallel", "arbitrary")),
    )(*xs, *ts, w3d)

    return jnp.sum(partials)


def square_angular_loss_pallas(inp, target, weight=None):
    """Single-head convenience wrapper (matches square_angular_loss)."""
    return _tags_angular_loss_fused([inp], [target], (1.0,), weight)


class TagsAngularLossPallas:
    def __init__(self, tags_coefficients=(1.0, 0.8, 0.5), classes=4):
        self.tags_coefficients = tuple(float(a) for a in tags_coefficients)
        self.classes = classes

    def __call__(self, inputs, targets, weight=None):
        assert isinstance(inputs, (list, tuple))
        if len(inputs) == 1:
            targets = [targets]
        assert len(inputs) == len(targets) == len(self.tags_coefficients)
        for inp in inputs:
            assert inp.shape[1] == self.classes

        shapes = {tuple(inp.shape) for inp in inputs}
        if len(shapes) == 1:
            # All heads share a shape: single fused pallas_call.
            return _tags_angular_loss_fused(list(inputs), list(targets),
                                            self.tags_coefficients, weight)
        # Fallback: one call per head (still fully in-kernel per head).
        loss = jnp.float32(0.0)
        for inp, tgt, a in zip(inputs, targets, self.tags_coefficients):
            loss = loss + _tags_angular_loss_fused([inp], [tgt], (a,), weight)
        return loss


def _ref_loss(inputs, targets, coeffs, classes, weight):
    """Pure-JAX reference mirroring the PyTorch forward (N == 1)."""
    total = jnp.float32(0.0)
    for inp, tgt, a in zip(inputs, targets, coeffs):
        inp = inp.astype(jnp.float32)
        oh = jax.nn.one_hot(tgt, classes, axis=1, dtype=jnp.float32)

        def nrm(v):
            n = jnp.sqrt(jnp.sum(v * v, axis=1, keepdims=True))
            return v / jnp.maximum(n, 1e-8) * STABILITY

        cos = jnp.sum(nrm(inp) * nrm(oh), axis=1)
        err = jnp.arccos(cos)
        if weight is not None:
            total = total + jnp.float32(a) * jnp.sum(err * err * weight[None])
        else:
            total = total + jnp.float32(a) * jnp.sum(err * err)
    return total


if __name__ == "__main__":
    key = jax.random.PRNGKey(0)
    N, C = 1, 4
    D, H, W = 4, 16, 36      # P = 2304 = 18 rows of 128 -> zero-copy 3-D view
    coeffs = (1.0, 0.8, 0.5)

    keys = jax.random.split(key, 8)
    inputs = [jax.random.normal(keys[i], (N, C, D, H, W), jnp.float32)
              for i in range(3)]
    targets = [jax.random.randint(keys[3 + i], (N, D, H, W), 0, C)
               for i in range(3)]
    weight = jax.random.uniform(keys[7], (D, H, W), jnp.float32)

    # fused three-head loss with weights (f32 activations)
    loss_fn = TagsAngularLossPallas(coeffs, classes=C)
    loss = jax.block_until_ready(loss_fn(inputs, targets, weight))
    ref = jax.block_until_ready(_ref_loss(inputs, targets, coeffs, C, weight))
    assert jnp.isfinite(loss), "kernel produced non-finite loss"
    assert jnp.allclose(loss, ref, rtol=5e-3, atol=1e-2), (loss, ref)

    # single-head path, no weight, bf16 activations on the wire
    inp_bf16 = inputs[0].astype(jnp.bfloat16)
    loss1 = jax.block_until_ready(
        TagsAngularLossPallas((1.0,), classes=C)([inp_bf16], targets[0]))
    ref1 = jax.block_until_ready(
        _ref_loss([inp_bf16], [targets[0]], (1.0,), C, None))
    assert jnp.allclose(loss1, ref1, rtol=5e-3, atol=1e-2), (loss1, ref1)

    print("KERNEL_OK")
</pallas_src>

<mosaic_0001>
module attributes {stable_mosaic.version = 11 : i64} {
  func.func @kernel(%arg0: i32, %arg1: i32, %arg2: memref<4x16x128xf32, #tpu.memory_space<vmem>>, %arg3: memref<4x16x128xf32, #tpu.memory_space<vmem>>, %arg4: memref<4x16x128xf32, #tpu.memory_space<vmem>>, %arg5: memref<1x16x128xi32, #tpu.memory_space<vmem>>, %arg6: memref<1x16x128xi32, #tpu.memory_space<vmem>>, %arg7: memref<1x16x128xi32, #tpu.memory_space<vmem>>, %arg8: memref<1x16x128xf32, #tpu.memory_space<vmem>>, %arg9: memref<1x16x128xf32, #tpu.memory_space<vmem>>) attributes {dimension_semantics = [#tpu.dimension_semantics<parallel>, #tpu.dimension_semantics<arbitrary>], iteration_bounds = array<i64: 1, 2>, scalar_prefetch = 0 : i64, scratch_operands = 0 : i64, tpu.core_type = #tpu.core_type<tc>, window_params = [{transform_indices = @transform_0, window_bounds = array<i64: 4, 16, 128>}, {transform_indices = @transform_1, window_bounds = array<i64: 4, 16, 128>}, {transform_indices = @transform_2, window_bounds = array<i64: 4, 16, 128>}, {transform_indices = @transform_3, window_bounds = array<i64: 1, 16, 128>}, {transform_indices = @transform_4, window_bounds = array<i64: 1, 16, 128>}, {transform_indices = @transform_5, window_bounds = array<i64: 1, 16, 128>}, {transform_indices = @transform_6, window_bounds = array<i64: 1, 16, 128>}, {transform_indices = @transform_7, window_bounds = array<i64: 1, 16, 128>}]} {
    %c0_i32 = arith.constant 0 : i32
    %0 = arith.cmpi eq, %arg1, %c0_i32 : i32
    %1 = arith.extui %0 : i1 to i32
    %c0_i32_0 = arith.constant 0 : i32
    %2 = arith.cmpi ne, %1, %c0_i32_0 : i32
    scf.if %2 {
      %cst_101 = arith.constant 0.000000e+00 : f32
      %208 = vector.broadcast %cst_101 : f32 to vector<1x16x128xf32>
      %c0_102 = arith.constant 0 : index
      %c0_103 = arith.constant 0 : index
      %c0_104 = arith.constant 0 : index
      %209 = vector.load %arg9[%c0_102, %c0_103, %c0_104] : memref<1x16x128xf32, #tpu.memory_space<vmem>>, vector<1x16x128xf32>
      tpu.vector_store %arg9[%c0_102, %c0_103, %c0_104], %208 {strides = array<i32>} : memref<1x16x128xf32, #tpu.memory_space<vmem>>, vector<1x16x128xf32>,
    } else {
    }
    %3 = tpu.iota {dimensions = array<i32: 0>} : vector<16x128xi32>
    %4 = tpu.iota {dimensions = array<i32: 1>} : vector<16x128xi32>
    %c2_i32 = arith.constant 2 : i32
    %5 = arith.muli %arg0, %c2_i32 : i32
    %6 = arith.addi %5, %arg1 : i32
    %c16_i32 = arith.constant 16 : i32
    %7 = arith.muli %6, %c16_i32 : i32
    %8 = vector.broadcast %7 : i32 to vector<16x128xi32>
    %9 = arith.addi %8, %3 : vector<16x128xi32>
    %c128_i32 = arith.constant 128 : i32
    %10 = vector.broadcast %c128_i32 : i32 to vector<16x128xi32>
    %11 = arith.muli %9, %10 : vector<16x128xi32>
    %12 = arith.addi %11, %4 : vector<16x128xi32>
    %c2304_i32 = arith.constant 2304 : i32
    %13 = vector.broadcast %c2304_i32 : i32 to vector<16x128xi32>
    %14 = arith.cmpi slt, %12, %13 : vector<16x128xi32>
    %c0 = arith.constant 0 : index
    %c0_1 = arith.constant 0 : index
    %c0_2 = arith.constant 0 : index
    %15 = vector.load %arg8[%c0, %c0_1, %c0_2] : memref<1x16x128xf32, #tpu.memory_space<vmem>>, vector<1x16x128xf32>
    %16 = vector.shape_cast %15 : vector<1x16x128xf32> to vector<16x128xf32>
    %cst = arith.constant 0.000000e+00 : f32
    %17 = vector.broadcast %cst : f32 to vector<16x128xf32>
    %c0_3 = arith.constant 0 : index
    %c0_4 = arith.constant 0 : index
    %c0_5 = arith.constant 0 : index
    %18 = vector.load %arg5[%c0_3, %c0_4, %c0_5] : memref<1x16x128xi32, #tpu.memory_space<vmem>>, vector<1x16x128xi32>
    %19 = vector.shape_cast %18 : vector<1x16x128xi32> to vector<16x128xi32>
    %cst_6 = arith.constant 0.000000e+00 : f32
    %20 = vector.broadcast %cst_6 : f32 to vector<16x128xf32>
    %cst_7 = arith.constant 0.000000e+00 : f32
    %21 = vector.broadcast %cst_7 : f32 to vector<16x128xf32>
    %c0_8 = arith.constant 0 : index
    %c0_9 = arith.constant 0 : index
    %c0_10 = arith.constant 0 : index
    %22 = vector.load %arg2[%c0_8, %c0_9, %c0_10] : memref<4x16x128xf32, #tpu.memory_space<vmem>>, vector<1x16x128xf32>
    %23 = vector.shape_cast %22 : vector<1x16x128xf32> to vector<16x128xf32>
    %24 = arith.mulf %23, %23 : vector<16x128xf32>
    %25 = arith.addf %20, %24 : vector<16x128xf32>
    %c0_i32_11 = arith.constant 0 : i32
    %26 = vector.broadcast %c0_i32_11 : i32 to vector<16x128xi32>
    %27 = arith.cmpi eq, %19, %26 : vector<16x128xi32>
    %cst_12 = arith.constant 0.000000e+00 : f32
    %28 = vector.broadcast %cst_12 : f32 to vector<16x128xf32>
    %29 = arith.select %27, %23, %28 : vector<16x128xi1>, vector<16x128xf32>
    %30 = arith.addf %21, %29 : vector<16x128xf32>
    %c1 = arith.constant 1 : index
    %c0_13 = arith.constant 0 : index
    %c0_14 = arith.constant 0 : index
    %31 = vector.load %arg2[%c1, %c0_13, %c0_14] : memref<4x16x128xf32, #tpu.memory_space<vmem>>, vector<1x16x128xf32>
    %32 = vector.shape_cast %31 : vector<1x16x128xf32> to vector<16x128xf32>
    %33 = arith.mulf %32, %32 : vector<16x128xf32>
    %34 = arith.addf %25, %33 : vector<16x128xf32>
    %c1_i32 = arith.constant 1 : i32
    %35 = vector.broadcast %c1_i32 : i32 to vector<16x128xi32>
    %36 = arith.cmpi eq, %19, %35 : vector<16x128xi32>
    %cst_15 = arith.constant 0.000000e+00 : f32
    %37 = vector.broadcast %cst_15 : f32 to vector<16x128xf32>
    %38 = arith.select %36, %32, %37 : vector<16x128xi1>, vector<16x128xf32>
    %39 = arith.addf %30, %38 : vector<16x128xf32>
    %c2 = arith.constant 2 : index
    %c0_16 = arith.constant 0 : index
    %c0_17 = arith.constant 0 : index
    %40 = vector.load %arg2[%c2, %c0_16, %c0_17] : memref<4x16x128xf32, #tpu.memory_space<vmem>>, vector<1x16x128xf32>
    %41 = vector.shape_cast %40 : vector<1x16x128xf32> to vector<16x128xf32>
    %42 = arith.mulf %41, %41 : vector<16x128xf32>
    %43 = arith.addf %34, %42 : vector<16x128xf32>
    %c2_i32_18 = arith.constant 2 : i32
    %44 = vector.broadcast %c2_i32_18 : i32 to vector<16x128xi32>
    %45 = arith.cmpi eq, %19, %44 : vector<16x128xi32>
    %cst_19 = arith.constant 0.000000e+00 : f32
    %46 = vector.broadcast %cst_19 : f32 to vector<16x128xf32>
    %47 = arith.select %45, %41, %46 : vector<16x128xi1>, vector<16x128xf32>
    %48 = arith.addf %39, %47 : vector<16x128xf32>
    %c3 = arith.constant 3 : index
    %c0_20 = arith.constant 0 : index
    %c0_21 = arith.constant 0 : index
    %49 = vector.load %arg2[%c3, %c0_20, %c0_21] : memref<4x16x128xf32, #tpu.memory_space<vmem>>, vector<1x16x128xf32>
    %50 = vector.shape_cast %49 : vector<1x16x128xf32> to vector<16x128xf32>
    %51 = arith.mulf %50, %50 : vector<16x128xf32>
    %52 = arith.addf %43, %51 : vector<16x128xf32>
    %c3_i32 = arith.constant 3 : i32
    %53 = vector.broadcast %c3_i32 : i32 to vector<16x128xi32>
    %54 = arith.cmpi eq, %19, %53 : vector<16x128xi32>
    %cst_22 = arith.constant 0.000000e+00 : f32
    %55 = vector.broadcast %cst_22 : f32 to vector<16x128xf32>
    %56 = arith.select %54, %50, %55 : vector<16x128xi1>, vector<16x128xf32>
    %57 = arith.addf %48, %56 : vector<16x128xf32>
    %cst_23 = arith.constant 1.000000e-16 : f32
    %58 = vector.broadcast %cst_23 : f32 to vector<16x128xf32>
    %59 = arith.maximumf %52, %58 : vector<16x128xf32>
    %60 = math.rsqrt %59 : vector<16x128xf32>
    %cst_24 = arith.constant 0.999997973 : f32
    %61 = vector.broadcast %cst_24 : f32 to vector<16x128xf32>
    %62 = arith.mulf %61, %57 : vector<16x128xf32>
    %63 = arith.mulf %62, %60 : vector<16x128xf32>
    %64 = arith.mulf %63, %63 : vector<16x128xf32>
    %cst_25 = arith.constant 1.000000e+00 : f32
    %65 = vector.broadcast %cst_25 : f32 to vector<16x128xf32>
    %66 = arith.subf %65, %64 : vector<16x128xf32>
    %cst_26 = arith.constant 0.000000e+00 : f32
    %67 = vector.broadcast %cst_26 : f32 to vector<16x128xf32>
    %68 = arith.maximumf %66, %67 : vector<16x128xf32>
    %69 = math.sqrt %68 : vector<16x128xf32>
    %cst_27 = arith.constant 1.000000e+00 : f32
    %70 = vector.broadcast %cst_27 : f32 to vector<16x128xf32>
    %71 = arith.addf %70, %63 : vector<16x128xf32>
    %72 = math.atan2 %69, %71 : vector<16x128xf32>
    %cst_28 = arith.constant 2.000000e+00 : f32
    %73 = vector.broadcast %cst_28 : f32 to vector<16x128xf32>
    %74 = arith.mulf %73, %72 : vector<16x128xf32>
    %75 = arith.mulf %74, %74 : vector<16x128xf32>
    %cst_29 = arith.constant 1.000000e+00 : f32
    %76 = vector.broadcast %cst_29 : f32 to vector<16x128xf32>
    %77 = arith.mulf %76, %75 : vector<16x128xf32>
    %78 = arith.addf %17, %77 : vector<16x128xf32>
    %c0_30 = arith.constant 0 : index
    %c0_31 = arith.constant 0 : index
    %c0_32 = arith.constant 0 : index
    %79 = vector.load %arg6[%c0_30, %c0_31, %c0_32] : memref<1x16x128xi32, #tpu.memory_space<vmem>>, vector<1x16x128xi32>
    %80 = vector.shape_cast %79 : vector<1x16x128xi32> to vector<16x128xi32>
    %cst_33 = arith.constant 0.000000e+00 : f32
    %81 = vector.broadcast %cst_33 : f32 to vector<16x128xf32>
    %cst_34 = arith.constant 0.000000e+00 : f32
    %82 = vector.broadcast %cst_34 : f32 to vector<16x128xf32>
    %c0_35 = arith.constant 0 : index
    %c0_36 = arith.constant 0 : index
    %c0_37 = arith.constant 0 : index
    %83 = vector.load %arg3[%c0_35, %c0_36, %c0_37] : memref<4x16x128xf32, #tpu.memory_space<vmem>>, vector<1x16x128xf32>
    %84 = vector.shape_cast %83 : vector<1x16x128xf32> to vector<16x128xf32>
    %85 = arith.mulf %84, %84 : vector<16x128xf32>
    %86 = arith.addf %81, %85 : vector<16x128xf32>
    %c0_i32_38 = arith.constant 0 : i32
    %87 = vector.broadcast %c0_i32_38 : i32 to vector<16x128xi32>
    %88 = arith.cmpi eq, %80, %87 : vector<16x128xi32>
    %cst_39 = arith.constant 0.000000e+00 : f32
    %89 = vector.broadcast %cst_39 : f32 to vector<16x128xf32>
    %90 = arith.select %88, %84, %89 : vector<16x128xi1>, vector<16x128xf32>
    %91 = arith.addf %82, %90 : vector<16x128xf32>
    %c1_40 = arith.constant 1 : index
    %c0_41 = arith.constant 0 : index
    %c0_42 = arith.constant 0 : index
    %92 = vector.load %arg3[%c1_40, %c0_41, %c0_42] : memref<4x16x128xf32, #tpu.memory_space<vmem>>, vector<1x16x128xf32>
    %93 = vector.shape_cast %92 : vector<1x16x128xf32> to vector<16x128xf32>
    %94 = arith.mulf %93, %93 : vector<16x128xf32>
    %95 = arith.addf %86, %94 : vector<16x128xf32>
    %c1_i32_43 = arith.constant 1 : i32
    %96 = vector.broadcast %c1_i32_43 : i32 to vector<16x128xi32>
    %97 = arith.cmpi eq, %80, %96 : vector<16x128xi32>
    %cst_44 = arith.constant 0.000000e+00 : f32
    %98 = vector.broadcast %cst_44 : f32 to vector<16x128xf32>
    %99 = arith.select %97, %93, %98 : vector<16x128xi1>, vector<16x128xf32>
    %100 = arith.addf %91, %99 : vector<16x128xf32>
    %c2_45 = arith.constant 2 : index
    %c0_46 = arith.constant 0 : index
    %c0_47 = arith.constant 0 : index
    %101 = vector.load %arg3[%c2_45, %c0_46, %c0_47] : memref<4x16x128xf32, #tpu.memory_space<vmem>>, vector<1x16x128xf32>
    %102 = vector.shape_cast %101 : vector<1x16x128xf32> to vector<16x128xf32>
    %103 = arith.mulf %102, %102 : vector<16x128xf32>
    %104 = arith.addf %95, %103 : vector<16x128xf32>
    %c2_i32_48 = arith.constant 2 : i32
    %105 = vector.broadcast %c2_i32_48 : i32 to vector<16x128xi32>
    %106 = arith.cmpi eq, %80, %105 : vector<16x128xi32>
    %cst_49 = arith.constant 0.000000e+00 : f32
    %107 = vector.broadcast %cst_49 : f32 to vector<16x128xf32>
    %108 = arith.select %106, %102, %107 : vector<16x128xi1>, vector<16x128xf32>
    %109 = arith.addf %100, %108 : vector<16x128xf32>
    %c3_50 = arith.constant 3 : index
    %c0_51 = arith.constant 0 : index
    %c0_52 = arith.constant 0 : index
    %110 = vector.load %arg3[%c3_50, %c0_51, %c0_52] : memref<4x16x128xf32, #tpu.memory_space<vmem>>, vector<1x16x128xf32>
    %111 = vector.shape_cast %110 : vector<1x16x128xf32> to vector<16x128xf32>
    %112 = arith.mulf %111, %111 : vector<16x128xf32>
    %113 = arith.addf %104, %112 : vector<16x128xf32>
    %c3_i32_53 = arith.constant 3 : i32
    %114 = vector.broadcast %c3_i32_53 : i32 to vector<16x128xi32>
    %115 = arith.cmpi eq, %80, %114 : vector<16x128xi32>
    %cst_54 = arith.constant 0.000000e+00 : f32
    %116 = vector.broadcast %cst_54 : f32 to vector<16x128xf32>
    %117 = arith.select %115, %111, %116 : vector<16x128xi1>, vector<16x128xf32>
    %118 = arith.addf %109, %117 : vector<16x128xf32>
    %cst_55 = arith.constant 1.000000e-16 : f32
    %119 = vector.broadcast %cst_55 : f32 to vector<16x128xf32>
    %120 = arith.maximumf %113, %119 : vector<16x128xf32>
    %121 = math.rsqrt %120 : vector<16x128xf32>
    %cst_56 = arith.constant 0.999997973 : f32
    %122 = vector.broadcast %cst_56 : f32 to vector<16x128xf32>
    %123 = arith.mulf %122, %118 : vector<16x128xf32>
    %124 = arith.mulf %123, %121 : vector<16x128xf32>
    %125 = arith.mulf %124, %124 : vector<16x128xf32>
    %cst_57 = arith.constant 1.000000e+00 : f32
    %126 = vector.broadcast %cst_57 : f32 to vector<16x128xf32>
    %127 = arith.subf %126, %125 : vector<16x128xf32>
    %cst_58 = arith.constant 0.000000e+00 : f32
    %128 = vector.broadcast %cst_58 : f32 to vector<16x128xf32>
    %129 = arith.maximumf %127, %128 : vector<16x128xf32>
    %130 = math.sqrt %129 : vector<16x128xf32>
    %cst_59 = arith.constant 1.000000e+00 : f32
    %131 = vector.broadcast %cst_59 : f32 to vector<16x128xf32>
    %132 = arith.addf %131, %124 : vector<16x128xf32>
    %133 = math.atan2 %130, %132 : vector<16x128xf32>
    %cst_60 = arith.constant 2.000000e+00 : f32
    %134 = vector.broadcast %cst_60 : f32 to vector<16x128xf32>
    %135 = arith.mulf %134, %133 : vector<16x128xf32>
    %136 = arith.mulf %135, %135 : vector<16x128xf32>
    %cst_61 = arith.constant 8.000000e-01 : f32
    %137 = vector.broadcast %cst_61 : f32 to vector<16x128xf32>
    %138 = arith.mulf %137, %136 : vector<16x128xf32>
    %139 = arith.addf %78, %138 : vector<16x128xf32>
    %c0_62 = arith.constant 0 : index
    %c0_63 = arith.constant 0 : index
    %c0_64 = arith.constant 0 : index
    %140 = vector.load %arg7[%c0_62, %c0_63, %c0_64] : memref<1x16x128xi32, #tpu.memory_space<vmem>>, vector<1x16x128xi32>
    %141 = vector.shape_cast %140 : vector<1x16x128xi32> to vector<16x128xi32>
    %cst_65 = arith.constant 0.000000e+00 : f32
    %142 = vector.broadcast %cst_65 : f32 to vector<16x128xf32>
    %cst_66 = arith.constant 0.000000e+00 : f32
    %143 = vector.broadcast %cst_66 : f32 to vector<16x128xf32>
    %c0_67 = arith.constant 0 : index
    %c0_68 = arith.constant 0 : index
    %c0_69 = arith.constant 0 : index
    %144 = vector.load %arg4[%c0_67, %c0_68, %c0_69] : memref<4x16x128xf32, #tpu.memory_space<vmem>>, vector<1x16x128xf32>
    %145 = vector.shape_cast %144 : vector<1x16x128xf32> to vector<16x128xf32>
    %146 = arith.mulf %145, %145 : vector<16x128xf32>
    %147 = arith.addf %142, %146 : vector<16x128xf32>
    %c0_i32_70 = arith.constant 0 : i32
    %148 = vector.broadcast %c0_i32_70 : i32 to vector<16x128xi32>
    %149 = arith.cmpi eq, %141, %148 : vector<16x128xi32>
    %cst_71 = arith.constant 0.000000e+00 : f32
    %150 = vector.broadcast %cst_71 : f32 to vector<16x128xf32>
    %151 = arith.select %149, %145, %150 : vector<16x128xi1>, vector<16x128xf32>
    %152 = arith.addf %143, %151 : vector<16x128xf32>
    %c1_72 = arith.constant 1 : index
    %c0_73 = arith.constant 0 : index
    %c0_74 = arith.constant 0 : index
    %153 = vector.load %arg4[%c1_72, %c0_73, %c0_74] : memref<4x16x128xf32, #tpu.memory_space<vmem>>, vector<1x16x128xf32>
    %154 = vector.shape_cast %153 : vector<1x16x128xf32> to vector<16x128xf32>
    %155 = arith.mulf %154, %154 : vector<16x128xf32>
    %156 = arith.addf %147, %155 : vector<16x128xf32>
    %c1_i32_75 = arith.constant 1 : i32
    %157 = vector.broadcast %c1_i32_75 : i32 to vector<16x128xi32>
    %158 = arith.cmpi eq, %141, %157 : vector<16x128xi32>
    %cst_76 = arith.constant 0.000000e+00 : f32
    %159 = vector.broadcast %cst_76 : f32 to vector<16x128xf32>
    %160 = arith.select %158, %154, %159 : vector<16x128xi1>, vector<16x128xf32>
    %161 = arith.addf %152, %160 : vector<16x128xf32>
    %c2_77 = arith.constant 2 : index
    %c0_78 = arith.constant 0 : index
    %c0_79 = arith.constant 0 : index
    %162 = vector.load %arg4[%c2_77, %c0_78, %c0_79] : memref<4x16x128xf32, #tpu.memory_space<vmem>>, vector<1x16x128xf32>
    %163 = vector.shape_cast %162 : vector<1x16x128xf32> to vector<16x128xf32>
    %164 = arith.mulf %163, %163 : vector<16x128xf32>
    %165 = arith.addf %156, %164 : vector<16x128xf32>
    %c2_i32_80 = arith.constant 2 : i32
    %166 = vector.broadcast %c2_i32_80 : i32 to vector<16x128xi32>
    %167 = arith.cmpi eq, %141, %166 : vector<16x128xi32>
    %cst_81 = arith.constant 0.000000e+00 : f32
    %168 = vector.broadcast %cst_81 : f32 to vector<16x128xf32>
    %169 = arith.select %167, %163, %168 : vector<16x128xi1>, vector<16x128xf32>
    %170 = arith.addf %161, %169 : vector<16x128xf32>
    %c3_82 = arith.constant 3 : index
    %c0_83 = arith.constant 0 : index
    %c0_84 = arith.constant 0 : index
    %171 = vector.load %arg4[%c3_82, %c0_83, %c0_84] : memref<4x16x128xf32, #tpu.memory_space<vmem>>, vector<1x16x128xf32>
    %172 = vector.shape_cast %171 : vector<1x16x128xf32> to vector<16x128xf32>
    %173 = arith.mulf %172, %172 : vector<16x128xf32>
    %174 = arith.addf %165, %173 : vector<16x128xf32>
    %c3_i32_85 = arith.constant 3 : i32
    %175 = vector.broadcast %c3_i32_85 : i32 to vector<16x128xi32>
    %176 = arith.cmpi eq, %141, %175 : vector<16x128xi32>
    %cst_86 = arith.constant 0.000000e+00 : f32
    %177 = vector.broadcast %cst_86 : f32 to vector<16x128xf32>
    %178 = arith.select %176, %172, %177 : vector<16x128xi1>, vector<16x128xf32>
    %179 = arith.addf %170, %178 : vector<16x128xf32>
    %cst_87 = arith.constant 1.000000e-16 : f32
    %180 = vector.broadcast %cst_87 : f32 to vector<16x128xf32>
    %181 = arith.maximumf %174, %180 : vector<16x128xf32>
    %182 = math.rsqrt %181 : vector<16x128xf32>
    %cst_88 = arith.constant 0.999997973 : f32
    %183 = vector.broadcast %cst_88 : f32 to vector<16x128xf32>
    %184 = arith.mulf %183, %179 : vector<16x128xf32>
    %185 = arith.mulf %184, %182 : vector<16x128xf32>
    %186 = arith.mulf %185, %185 : vector<16x128xf32>
    %cst_89 = arith.constant 1.000000e+00 : f32
    %187 = vector.broadcast %cst_89 : f32 to vector<16x128xf32>
    %188 = arith.subf %187, %186 : vector<16x128xf32>
    %cst_90 = arith.constant 0.000000e+00 : f32
    %189 = vector.broadcast %cst_90 : f32 to vector<16x128xf32>
    %190 = arith.maximumf %188, %189 : vector<16x128xf32>
    %191 = math.sqrt %190 : vector<16x128xf32>
    %cst_91 = arith.constant 1.000000e+00 : f32
    %192 = vector.broadcast %cst_91 : f32 to vector<16x128xf32>
    %193 = arith.addf %192, %185 : vector<16x128xf32>
    %194 = math.atan2 %191, %193 : vector<16x128xf32>
    %cst_92 = arith.constant 2.000000e+00 : f32
    %195 = vector.broadcast %cst_92 : f32 to vector<16x128xf32>
    %196 = arith.mulf %195, %194 : vector<16x128xf32>
    %197 = arith.mulf %196, %196 : vector<16x128xf32>
    %cst_93 = arith.constant 5.000000e-01 : f32
    %198 = vector.broadcast %cst_93 : f32 to vector<16x128xf32>
    %199 = arith.mulf %198, %197 : vector<16x128xf32>
    %200 = arith.addf %139, %199 : vector<16x128xf32>
    %c0_94 = arith.constant 0 : index
    %c0_95 = arith.constant 0 : index
    %c0_96 = arith.constant 0 : index
    %201 = vector.load %arg9[%c0_94, %c0_95, %c0_96] : memref<1x16x128xf32, #tpu.memory_space<vmem>>, vector<1x16x128xf32>
    %202 = arith.mulf %200, %16 : vector<16x128xf32>
    %cst_97 = arith.constant 0.000000e+00 : f32
    %203 = vector.broadcast %cst_97 : f32 to vector<16x128xf32>
    %204 = arith.select %14, %202, %203 : vector<16x128xi1>, vector<16x128xf32>
    %205 = vector.shape_cast %204 : vector<16x128xf32> to vector<1x16x128xf32>
    %206 = arith.addf %201, %205 : vector<1x16x128xf32>
    %c0_98 = arith.constant 0 : index
    %c0_99 = arith.constant 0 : index
    %c0_100 = arith.constant 0 : index
    %207 = vector.load %arg9[%c0_98, %c0_99, %c0_100] : memref<1x16x128xf32, #tpu.memory_space<vmem>>, vector<1x16x128xf32>
    tpu.vector_store %arg9[%c0_98, %c0_99, %c0_100], %206 {strides = array<i32>} : memref<1x16x128xf32, #tpu.memory_space<vmem>>, vector<1x16x128xf32>,
    return
  }
  func.func @transform_0(%arg0: i32, %arg1: i32) -> (i32, i32, i32) {
    %c2_i32 = arith.constant 2 : i32
    %0 = arith.muli %arg0, %c2_i32 : i32
    %1 = arith.addi %0, %arg1 : i32
    %c1_i32 = arith.constant 1 : i32
    %2 = arith.minsi %1, %c1_i32 : i32
    %c0_i32 = arith.constant 0 : i32
    %c0_i32_0 = arith.constant 0 : i32
    %c0_i32_1 = arith.constant 0 : i32
    return %c0_i32, %2, %c0_i32_0 : i32, i32, i32
  }
  func.func @transform_1(%arg0: i32, %arg1: i32) -> (i32, i32, i32) {
    %c2_i32 = arith.constant 2 : i32
    %0 = arith.muli %arg0, %c2_i32 : i32
    %1 = arith.addi %0, %arg1 : i32
    %c1_i32 = arith.constant 1 : i32
    %2 = arith.minsi %1, %c1_i32 : i32
    %c0_i32 = arith.constant 0 : i32
    %c0_i32_0 = arith.constant 0 : i32
    %c0_i32_1 = arith.constant 0 : i32
    return %c0_i32, %2, %c0_i32_0 : i32, i32, i32
  }
  func.func @transform_2(%arg0: i32, %arg1: i32) -> (i32, i32, i32) {
    %c2_i32 = arith.constant 2 : i32
    %0 = arith.muli %arg0, %c2_i32 : i32
    %1 = arith.addi %0, %arg1 : i32
    %c1_i32 = arith.constant 1 : i32
    %2 = arith.minsi %1, %c1_i32 : i32
    %c0_i32 = arith.constant 0 : i32
    %c0_i32_0 = arith.constant 0 : i32
    %c0_i32_1 = arith.constant 0 : i32
    return %c0_i32, %2, %c0_i32_0 : i32, i32, i32
  }
  func.func @transform_3(%arg0: i32, %arg1: i32) -> (i32, i32, i32) {
    %c2_i32 = arith.constant 2 : i32
    %0 = arith.muli %arg0, %c2_i32 : i32
    %1 = arith.addi %0, %arg1 : i32
    %c0_i32 = arith.constant 0 : i32
    %c0_i32_0 = arith.constant 0 : i32
    %c0_i32_1 = arith.constant 0 : i32
    return %c0_i32, %1, %c0_i32_0 : i32, i32, i32
  }
  func.func @transform_4(%arg0: i32, %arg1: i32) -> (i32, i32, i32) {
    %c2_i32 = arith.constant 2 : i32
    %0 = arith.muli %arg0, %c2_i32 : i32
    %1 = arith.addi %0, %arg1 : i32
    %c0_i32 = arith.constant 0 : i32
    %c0_i32_0 = arith.constant 0 : i32
    %c0_i32_1 = arith.constant 0 : i32
    return %c0_i32, %1, %c0_i32_0 : i32, i32, i32
  }
  func.func @transform_5(%arg0: i32, %arg1: i32) -> (i32, i32, i32) {
    %c2_i32 = arith.constant 2 : i32
    %0 = arith.muli %arg0, %c2_i32 : i32
    %1 = arith.addi %0, %arg1 : i32
    %c0_i32 = arith.constant 0 : i32
    %c0_i32_0 = arith.constant 0 : i32
    %c0_i32_1 = arith.constant 0 : i32
    return %c0_i32, %1, %c0_i32_0 : i32, i32, i32
  }
  func.func @transform_6(%arg0: i32, %arg1: i32) -> (i32, i32, i32) {
    %c2_i32 = arith.constant 2 : i32
    %0 = arith.muli %arg0, %c2_i32 : i32
    %1 = arith.addi %0, %arg1 : i32
    %c0_i32 = arith.constant 0 : i32
    %c0_i32_0 = arith.constant 0 : i32
    %c0_i32_1 = arith.constant 0 : i32
    return %c0_i32, %1, %c0_i32_0 : i32, i32, i32
  }
  func.func @transform_7(%arg0: i32, %arg1: i32) -> (i32, i32, i32) {
    %c0_i32 = arith.constant 0 : i32
    %c0_i32_0 = arith.constant 0 : i32
    %c0_i32_1 = arith.constant 0 : i32
    return %arg0, %c0_i32, %c0_i32_0 : i32, i32, i32
  }
}

</mosaic_0001>

<bundles_post_ra>
// kernel: tpu_custom_call.1
= control target key start
LH: loop header
LB: loop body
LE: loop exit
PB: predicated region body
PF: predicated region fallthrough
CT: control target
= control target key end

     0   :  { %12 = vsyncpa [#allocation6], 0  ;;  %s2542_s24 = smov 0   ;;  %s2544_s25 = smov 0   ;;  %s3325_s0 = inlined_call_operand.vmem [shape: f32[4,18,128], index: 0, kind: input, shape index: {}]   ;;  %s3326_s1 = inlined_call_operand.vmem [shape: f32[4,18,128], index: 1, kind: input, shape index: {}]   ;;  %s3327_s2 = inlined_call_operand.vmem [shape: f32[4,18,128], index: 2, kind: input, shape index: {}]   ;;  %s3328_s3 = inlined_call_operand.vmem [shape: s32[1,32,128], index: 3, kind: input, shape index: {}]   ;;  %s3329_s4 = inlined_call_operand.vmem [shape: s32[1,32,128], index: 4, kind: input, shape index: {}]   ;;  %s3330_s5 = inlined_call_operand.vmem [shape: s32[1,32,128], index: 5, kind: input, shape index: {}]   ;;  %s3331_s6 = inlined_call_operand.vmem [shape: f32[1,32,128], index: 6, kind: input, shape index: {}]   ;;  %s3332_s7 = inlined_call_operand.hbm [shape: f32[1,16,128], index: 7, kind: output, shape index: {}]  }
   0x1   :  { %s2546_s26 = smov 0   ;;  %s2548_s27 = smov 0  }
   0x2   :  { %s2550_s28 = smov 0  }
   0x3 LB: > { %s1863_s29 = sadd.s32 4294967295, %s2398_s28   ;;  %s27_s30 = sadd.s32 1, %s2394_s27  ;;  %s2398_s28 = sphi %s2550_s28, %s18_s28   ;;  %s2394_s27 = sphi %s2548_s27, %s3361_s27   ;;  %s2390_s26 = sphi %s2546_s26, %s3360_s26   ;;  %s2386_s25 = sphi %s2544_s25, %s3359_s25   ;;  %s2382_s24 = sphi %s2542_s24, %s3358_s24  }
   0x4   : > { %p28_p0 = scmp.ge.s32.totalorder %s27_s30, 2  ;;  %p36_p1 = scmp.lt.s32.totalorder %s2394_s27, 1 }
   0x5   : > { %p52_p2 = scmp.ne.s32.totalorder %s2386_s25, %s2382_s24  ;;  %p53_p4 = scmp.eq.s32.totalorder %s2398_s28, 0 }
   0x6   : > { %s3363_s30 = smov (%p28_p0, %s27_s30), 0  ;;  %s45_s12 = sadd.s32 1, %s2386_s25 }
   0x7   : > { %s2575_s8 = scalar_select %p36_p1, %s2394_s27, 1 }
   0x8   : > { %p40_p3 = scmp.lt.s32.totalorder %s3363_s30, 1  ;;  %p2580_p5 = por %p53_p4, %p52_p2 }
   0x9   : > { %p1865_p7 = scmp.ge.s32.totalorder %s2398_s28, 2 }
   0xa   : > { %s41_s9 = scalar_select %p40_p3, %s3363_s30, 1 }
   0xb   : > { %292 = sbr.rel (%p1865_p7) target bundleno = 148 (0x94), region = 16 }
   0xc   : > { %s42_s11 = ssub.s32 %s2575_s8, %s41_s9 }
   0xd   : > { %p43_p6 = scmp.eq.s32.totalorder %s42_s11, 0 }
   0xf   : > { %s2587_s13 = scalar_select %p43_p6, %s2386_s25, %s45_s12  }
  0x10   : > { %295 = sbr.rel (!%p2580_p5) target bundleno = 60 (0x3c), region = 20  ;;  %s297_s14 = sand.u32 (%p2580_p5), 1, %s2386_s25  }
  0x11   : > { %s1867_s15 = sshll.u32 (%p2580_p5), %s2575_s8, 1  ;;  %s1866_s16 = sshll.u32 (%p2580_p5), %s297_s14, 6 }
  0x12   : > { %s305_s17 = ssub.s32 (%p2580_p5), 3, %s1867_s15  ;;  %s1947_s18 = sshll.u32 (%p2580_p5), %s2575_s8, 4 }
  0x13   : > { %p306_p8 = scmp.lt.s32.totalorder (%p2580_p5), %s305_s17, 2  ;;  %s2600_s21 = scalar_lea.vmem (%p2580_p5), %s3325_s0, %s1947_s18  }
  0x14   : > { %s2603_s23 = scalar_lea.vmem (%p2580_p5), [#allocation2], %s1866_s16  }
  0x15   : > { %s3365_s17 = smov (!%p306_p8, %s305_s17), 2 }
  0x16   : > { %s1868_s22 = sshll.u32 %s3365_s17, 9 }
  0x17   : > { %p1871_p9 = scmp.eq.s32.totalorder %s1868_s22, 0 }
  0x18   : > { %s2606_s9 = sshrl.u32 (!%p1871_p9), %s3365_s17, 1 }
  0x19   : > { %314 = sbr.rel (%p1871_p9) target bundleno = 60 (0x3c), region = 24  ;;  %p1872_p10 = scmp.le.s32.totalorder (!%p1871_p9), %s2606_s9, 0 }
  0x1e   : > { %1722 = sbr.rel (%p1872_p10) target bundleno = 43 (0x2b), region = 296  ;;  %s3334_s11 = smov (!%p1872_p10), %s2603_s23 }
  0x1f   : > { %s3335_s12 = smov (!%p1872_p10), %s2600_s21  ;;  %s2615_s14 = smov (!%p1872_p10), 0  }
  0x20   : > { %s2617_s15 = smov (!%p1872_p10), 0  }
  0x23 LB: >> { %v397_v0 = vld [vmem:[%s2406_s12] sm:$0xff]  ;;  %v399_v1 = vld [vmem:[%s2406_s12 + $0x8] sm:$0xff]  ;;  %v401_v2 = vld [vmem:[%s2406_s12 + $0x18] sm:$0xff]  ;;  %s413_s16 = sadd.s32 1, %s2410_s14  ;;  %s391_s15 = sadd.s32 1, %s2414_s15   ;;  %s2414_s15 = sphi %s2617_s15, %s391_s15   ;;  %s2410_s14 = sphi %s2615_s14, %s3336_s14   ;;  %s2406_s12 = sphi %s3335_s12, %s418_s12   ;;  %s2402_s11 = sphi %s3334_s11, %s419_s11  }
  0x24   : >> { %398 = vst [vmem:[%s2402_s11] sm:$0xff] %v397_v0  ;;  %400 = vst [vmem:[%s2402_s11 + $0x8] sm:$0xff] %v399_v1  ;;  %v403_v3 = vld [vmem:[%s2406_s12 + $0x20] sm:$0xff]  ;;  %v405_v4 = vld [vmem:[%s2406_s12 + $0x30] sm:$0xff]  ;;  %p414_p11 = scmp.ge.s32.totalorder %s413_s16, %s2606_s9  ;;  %p390_p12 = scmp.ge.s32.totalorder %s391_s15, %s2606_s9 }
  0x25   : >> { %402 = vst [vmem:[%s2402_s11 + $0x10] sm:$0xff] %v401_v2  ;;  %v407_v5 = vld [vmem:[%s2406_s12 + $0x38] sm:$0xff]  ;;  %404 = vst [vmem:[%s2402_s11 + $0x18] sm:$0xff] %v403_v3  ;;  %v409_v6 = vld [vmem:[%s2406_s12 + $0x48] sm:$0xff] }
  0x26   : >> { %406 = vst [vmem:[%s2402_s11 + $0x20] sm:$0xff] %v405_v4  ;;  %408 = vst [vmem:[%s2402_s11 + $0x28] sm:$0xff] %v407_v5  ;;  %v411_v7 = vld [vmem:[%s2406_s12 + $0x50] sm:$0xff]  ;;  %s3367_s16 = smov (%p414_p11, %s413_s16), 0  ;;  %393 = sbr.rel (!%p390_p12) target bundleno = 35 (0x23), region = 302 }
  0x27   : >> { %410 = vst [vmem:[%s2402_s11 + $0x30] sm:$0xff] %v409_v6  ;;  %412 = vst [vmem:[%s2402_s11 + $0x38] sm:$0xff] %v411_v7  ;;  %s1873_s18 = sshll.u32 %s3367_s16, 4  ;;  %s3336_s14 = smov %s3367_s16 }
  0x28   : >> { %s418_s12 = scalar_lea.vmem %s2600_s21, %s1873_s18   ;;  %s419_s11 = scalar_lea.vmem %s2603_s23, %s1873_s18 [#allocation2]  }
  0x2b PF: > { %s2636_s19 = sand.u32 1, %s3365_s17   ;;  %s1948_s20 = sshll.u32 %s2606_s9, 4 }
  0x2c   : > { %s2640_s22 = scalar_lea.vmem %s2600_s21, %s1948_s20   ;;  %s2643_s18 = scalar_lea.vmem %s2603_s23, %s1948_s20 [#allocation2]  }
  0x2d   : > { %p1878_p13 = scmp.le.s32.totalorder %s2636_s19, 0 }
  0x2e   : > { %s3337_s15 = smov (!%p1878_p13), %s2643_s18  ;;  %s3338_s11 = smov (!%p1878_p13), %s2640_s22 }
  0x2f   : > { %1736 = sbr.rel (%p1878_p13) target bundleno = 60 (0x3c), region = 307  ;;  %s2424_s12 = smov (!%p1878_p13), 0  }
  0x30   : > { %s2428_s14 = smov (!%p1878_p13), 0  }
  0x34 LB: >> { %v436_v8 = vld [vmem:[%s2422_s11] sm:$0xff]  ;;  %v438_v9 = vld [vmem:[%s2422_s11 + $0x18] sm:$0xff]  ;;  %v440_v10 = vld [vmem:[%s2422_s11 + $0x30] sm:$0xff]  ;;  %s444_s17 = sadd.s32 1, %s2426_s12  ;;  %s430_s14 = sadd.s32 1, %s2430_s14   ;;  %s2430_s14 = sphi %s2428_s14, %s430_s14   ;;  %s2426_s12 = sphi %s2424_s12, %s2425_s12   ;;  %s2422_s11 = sphi %s3338_s11, %s449_s11   ;;  %s2418_s15 = sphi %s3337_s15, %s450_s15  }
  0x35   : >> { %437 = vst [vmem:[%s2418_s15] sm:$0xff] %v436_v8  ;;  %439 = vst [vmem:[%s2418_s15 + $0x10] sm:$0xff] %v438_v9  ;;  %v442_v11 = vld [vmem:[%s2422_s11 + $0x48] sm:$0xff]  ;;  %p445_p0 = scmp.ge.s32.totalorder %s444_s17, %s2636_s19  ;;  %p429_p1 = scmp.ge.s32.totalorder %s430_s14, %s2636_s19 }
  0x36   : >> { %441 = vst [vmem:[%s2418_s15 + $0x20] sm:$0xff] %v440_v10  ;;  %443 = vst [vmem:[%s2418_s15 + $0x30] sm:$0xff] %v442_v11 }
  0x37   : >> { %s3369_s17 = smov (%p445_p0, %s444_s17), 0  ;;  %432 = sbr.rel (!%p429_p1) target bundleno = 52 (0x34), region = 313 }
  0x38   : >> { %s1879_s21 = sshll.u32 %s3369_s17, 3  ;;  %s2425_s12 = smov %s3369_s17  }
  0x39   : >> { %s449_s11 = scalar_lea.vmem %s2640_s22, %s1879_s21   ;;  %s450_s15 = scalar_lea.vmem %s2643_s18, %s1879_s21 [#allocation2]  }
  0x3c PF: > { %456 = sbr.rel (!%p2580_p5) target bundleno = 104 (0x68), region = 72  ;;  %s458_s23 = sand.u32 (%p2580_p5), 1, %s2386_s25  }
  0x3d   : > { %s1882_s9 = sshll.u32 (%p2580_p5), %s2575_s8, 1  ;;  %s1881_s16 = sshll.u32 (%p2580_p5), %s458_s23, 6 }
  0x3e   : > { %s466_s20 = ssub.s32 (%p2580_p5), 3, %s1882_s9  ;;  %s1950_s12 = sshll.u32 (%p2580_p5), %s2575_s8, 4 }
  0x3f   : > { %p467_p2 = scmp.lt.s32.totalorder (%p2580_p5), %s466_s20, 2  ;;  %s2672_s19 = scalar_lea.vmem (%p2580_p5), %s3326_s1, %s1950_s12  }
  0x40   : > { %s2675_s18 = scalar_lea.vmem (%p2580_p5), [#allocation3], %s1881_s16  }
  0x41   : > { %s3371_s20 = smov (!%p467_p2, %s466_s20), 2 }
  0x42   : > { %s1883_s22 = sshll.u32 %s3371_s20, 9 }
  0x43   : > { %p1886_p3 = scmp.eq.s32.totalorder %s1883_s22, 0 }
  0x44   : > { %s2678_s15 = sshrl.u32 (!%p1886_p3), %s3371_s20, 1 }
  0x45   : > { %475 = sbr.rel (%p1886_p3) target bundleno = 104 (0x68), region = 76  ;;  %p1887_p4 = scmp.le.s32.totalorder (!%p1886_p3), %s2678_s15, 0 }
  0x4a   : > { %1750 = sbr.rel (%p1887_p4) target bundleno = 87 (0x57), region = 318  ;;  %s3339_s17 = smov (!%p1887_p4), %s2675_s18 }
  0x4b   : > { %s3340_s21 = smov (!%p1887_p4), %s2672_s19  ;;  %s2687_s23 = smov (!%p1887_p4), 0  }
  0x4c   : > { %s2689_s9 = smov (!%p1887_p4), 0  }
  0x4f LB: >> { %v558_v12 = vld [vmem:[%s2438_s21] sm:$0xff]  ;;  %v560_v13 = vld [vmem:[%s2438_s21 + $0x8] sm:$0xff]  ;;  %v562_v14 = vld [vmem:[%s2438_s21 + $0x18] sm:$0xff]  ;;  %s574_s16 = sadd.s32 1, %s2442_s23  ;;  %s552_s9 = sadd.s32 1, %s2446_s9   ;;  %s2446_s9 = sphi %s2689_s9, %s552_s9   ;;  %s2442_s23 = sphi %s2687_s23, %s3341_s23   ;;  %s2438_s21 = sphi %s3340_s21, %s579_s21   ;;  %s2434_s17 = sphi %s3339_s17, %s580_s17  }
  0x50   : >> { %559 = vst [vmem:[%s2434_s17] sm:$0xff] %v558_v12  ;;  %561 = vst [vmem:[%s2434_s17 + $0x8] sm:$0xff] %v560_v13  ;;  %v564_v15 = vld [vmem:[%s2438_s21 + $0x20] sm:$0xff]  ;;  %v566_v16 = vld [vmem:[%s2438_s21 + $0x30] sm:$0xff]  ;;  %p575_p6 = scmp.ge.s32.totalorder %s574_s16, %s2678_s15  ;;  %p551_p7 = scmp.ge.s32.totalorder %s552_s9, %s2678_s15 }
  0x51   : >> { %563 = vst [vmem:[%s2434_s17 + $0x10] sm:$0xff] %v562_v14  ;;  %v568_v17 = vld [vmem:[%s2438_s21 + $0x38] sm:$0xff]  ;;  %565 = vst [vmem:[%s2434_s17 + $0x18] sm:$0xff] %v564_v15  ;;  %v570_v18 = vld [vmem:[%s2438_s21 + $0x48] sm:$0xff] }
  0x52   : >> { %567 = vst [vmem:[%s2434_s17 + $0x20] sm:$0xff] %v566_v16  ;;  %569 = vst [vmem:[%s2434_s17 + $0x28] sm:$0xff] %v568_v17  ;;  %v572_v19 = vld [vmem:[%s2438_s21 + $0x50] sm:$0xff]  ;;  %s3373_s16 = smov (%p575_p6, %s574_s16), 0  ;;  %554 = sbr.rel (!%p551_p7) target bundleno = 79 (0x4f), region = 324 }
  0x53   : >> { %571 = vst [vmem:[%s2434_s17 + $0x30] sm:$0xff] %v570_v18  ;;  %573 = vst [vmem:[%s2434_s17 + $0x38] sm:$0xff] %v572_v19  ;;  %s1888_s12 = sshll.u32 %s3373_s16, 4  ;;  %s3341_s23 = smov %s3373_s16 }
  0x54   : >> { %s579_s21 = scalar_lea.vmem %s2672_s19, %s1888_s12   ;;  %s580_s17 = scalar_lea.vmem %s2675_s18, %s1888_s12 [#allocation3]  }
  0x57 PF: > { %s2708_s11 = sand.u32 1, %s3371_s20   ;;  %s1951_s14 = sshll.u32 %s2678_s15, 4 }
  0x58   : > { %s2712_s22 = scalar_lea.vmem %s2672_s19, %s1951_s14   ;;  %s2715_s12 = scalar_lea.vmem %s2675_s18, %s1951_s14 [#allocation3]  }
  0x59   : > { %p1893_p8 = scmp.le.s32.totalorder %s2708_s11, 0 }
  0x5a   : > { %s3342_s9 = smov (!%p1893_p8), %s2715_s12  ;;  %s3343_s17 = smov (!%p1893_p8), %s2712_s22 }
  0x5b   : > { %1764 = sbr.rel (%p1893_p8) target bundleno = 104 (0x68), region = 329  ;;  %s2456_s21 = smov (!%p1893_p8), 0  }
  0x5c   : > { %s2460_s23 = smov (!%p1893_p8), 0  }
  0x60 LB: >> { %v597_v20 = vld [vmem:[%s2454_s17] sm:$0xff]  ;;  %v599_v21 = vld [vmem:[%s2454_s17 + $0x18] sm:$0xff]  ;;  %v601_v22 = vld [vmem:[%s2454_s17 + $0x30] sm:$0xff]  ;;  %s605_s20 = sadd.s32 1, %s2458_s21  ;;  %s591_s23 = sadd.s32 1, %s2462_s23   ;;  %s2462_s23 = sphi %s2460_s23, %s591_s23   ;;  %s2458_s21 = sphi %s2456_s21, %s2457_s21   ;;  %s2454_s17 = sphi %s3343_s17, %s610_s17   ;;  %s2450_s9 = sphi %s3342_s9, %s611_s9  }
  0x61   : >> { %598 = vst [vmem:[%s2450_s9] sm:$0xff] %v597_v20  ;;  %600 = vst [vmem:[%s2450_s9 + $0x10] sm:$0xff] %v599_v21  ;;  %v603_v23 = vld [vmem:[%s2454_s17 + $0x48] sm:$0xff]  ;;  %p606_p9 = scmp.ge.s32.totalorder %s605_s20, %s2708_s11  ;;  %p590_p10 = scmp.ge.s32.totalorder %s591_s23, %s2708_s11 }
  0x62   : >> { %602 = vst [vmem:[%s2450_s9 + $0x20] sm:$0xff] %v601_v22  ;;  %604 = vst [vmem:[%s2450_s9 + $0x30] sm:$0xff] %v603_v23 }
  0x63   : >> { %s3375_s20 = smov (%p606_p9, %s605_s20), 0  ;;  %593 = sbr.rel (!%p590_p10) target bundleno = 96 (0x60), region = 335 }
  0x64   : >> { %s1894_s19 = sshll.u32 %s3375_s20, 3  ;;  %s2457_s21 = smov %s3375_s20  }
  0x65   : >> { %s610_s17 = scalar_lea.vmem %s2712_s22, %s1894_s19   ;;  %s611_s9 = scalar_lea.vmem %s2715_s12, %s1894_s19 [#allocation3]  }
  0x68 PF: > { %617 = sbr.rel (!%p2580_p5) target bundleno = 148 (0x94), region = 124  ;;  %s619_s18 = sand.u32 (%p2580_p5), 1, %s2386_s25  }
  0x69   : > { %s1897_s15 = sshll.u32 (%p2580_p5), %s2575_s8, 1  ;;  %s1896_s16 = sshll.u32 (%p2580_p5), %s619_s18, 6 }
  0x6a   : > { %s627_s14 = ssub.s32 (%p2580_p5), 3, %s1897_s15  ;;  %s1953_s21 = sshll.u32 (%p2580_p5), %s2575_s8, 4 }
  0x6b   : > { %p628_p11 = scmp.lt.s32.totalorder (%p2580_p5), %s627_s14, 2  ;;  %s2744_s11 = scalar_lea.vmem (%p2580_p5), %s3327_s2, %s1953_s21  }
  0x6c   : > { %s2747_s10 = scalar_lea.vmem (%p2580_p5), [#allocation4], %s1896_s16  }
  0x6d   : > { %s3377_s14 = smov (!%p628_p11, %s627_s14), 2 }
  0x6e   : > { %s1898_s22 = sshll.u32 %s3377_s14, 9 }
  0x6f   : > { %p1901_p5 = scmp.eq.s32.totalorder %s1898_s22, 0 }
  0x70   : > { %s2750_s12 = sshrl.u32 (!%p1901_p5), %s3377_s14, 1 }
  0x71   : > { %636 = sbr.rel (%p1901_p5) target bundleno = 148 (0x94), region = 128  ;;  %p1902_p12 = scmp.le.s32.totalorder (!%p1901_p5), %s2750_s12, 0 }
  0x76   : > { %1778 = sbr.rel (%p1902_p12) target bundleno = 131 (0x83), region = 340  ;;  %s3344_s8 = smov (!%p1902_p12), %s2747_s10 }
  0x77   : > { %s3345_s9 = smov (!%p1902_p12), %s2744_s11  ;;  %s2759_s20 = smov (!%p1902_p12), 0  }
  0x78   : > { %s2761_s19 = smov (!%p1902_p12), 0  }
  0x7b LB: >> { %v719_v24 = vld [vmem:[%s2470_s9] sm:$0xff]  ;;  %v721_v25 = vld [vmem:[%s2470_s9 + $0x8] sm:$0xff]  ;;  %v723_v26 = vld [vmem:[%s2470_s9 + $0x18] sm:$0xff]  ;;  %s735_s18 = sadd.s32 1, %s2474_s20  ;;  %s713_s19 = sadd.s32 1, %s2478_s19   ;;  %s2478_s19 = sphi %s2761_s19, %s713_s19   ;;  %s2474_s20 = sphi %s2759_s20, %s3346_s20   ;;  %s2470_s9 = sphi %s3345_s9, %s740_s9   ;;  %s2466_s8 = sphi %s3344_s8, %s741_s8  }
  0x7c   : >> { %720 = vst [vmem:[%s2466_s8] sm:$0xff] %v719_v24  ;;  %722 = vst [vmem:[%s2466_s8 + $0x8] sm:$0xff] %v721_v25  ;;  %v725_v27 = vld [vmem:[%s2470_s9 + $0x20] sm:$0xff]  ;;  %v727_v28 = vld [vmem:[%s2470_s9 + $0x30] sm:$0xff]  ;;  %p736_p13 = scmp.ge.s32.totalorder %s735_s18, %s2750_s12  ;;  %p712_p0 = scmp.ge.s32.totalorder %s713_s19, %s2750_s12 }
  0x7d   : >> { %724 = vst [vmem:[%s2466_s8 + $0x10] sm:$0xff] %v723_v26  ;;  %v729_v29 = vld [vmem:[%s2470_s9 + $0x38] sm:$0xff]  ;;  %726 = vst [vmem:[%s2466_s8 + $0x18] sm:$0xff] %v725_v27  ;;  %v731_v30 = vld [vmem:[%s2470_s9 + $0x48] sm:$0xff] }
  0x7e   : >> { %728 = vst [vmem:[%s2466_s8 + $0x20] sm:$0xff] %v727_v28  ;;  %730 = vst [vmem:[%s2466_s8 + $0x28] sm:$0xff] %v729_v29  ;;  %v733_v31 = vld [vmem:[%s2470_s9 + $0x50] sm:$0xff]  ;;  %s3379_s18 = smov (%p736_p13, %s735_s18), 0  ;;  %715 = sbr.rel (!%p712_p0) target bundleno = 123 (0x7b), region = 346 }
  0x7f   : >> { %732 = vst [vmem:[%s2466_s8 + $0x30] sm:$0xff] %v731_v30  ;;  %734 = vst [vmem:[%s2466_s8 + $0x38] sm:$0xff] %v733_v31  ;;  %s1903_s15 = sshll.u32 %s3379_s18, 4  ;;  %s3346_s20 = smov %s3379_s18 }
  0x80   : >> { %s740_s9 = scalar_lea.vmem %s2744_s11, %s1903_s15   ;;  %s741_s8 = scalar_lea.vmem %s2747_s10, %s1903_s15 [#allocation4]  }
  0x83 PF: > { %s2780_s16 = sand.u32 1, %s3377_s14   ;;  %s1954_s21 = sshll.u32 %s2750_s12, 4 }
  0x84   : > { %s2784_s17 = scalar_lea.vmem %s2744_s11, %s1954_s21   ;;  %s2787_s23 = scalar_lea.vmem %s2747_s10, %s1954_s21 [#allocation4]  }
  0x85   : > { %p1908_p1 = scmp.le.s32.totalorder %s2780_s16, 0 }
  0x86   : > { %s3347_s22 = smov (!%p1908_p1), %s2787_s23  ;;  %s3348_s8 = smov (!%p1908_p1), %s2784_s17 }
  0x87   : > { %1792 = sbr.rel (%p1908_p1) target bundleno = 148 (0x94), region = 351  ;;  %s2488_s9 = smov (!%p1908_p1), 0  }
  0x88   : > { %s2492_s20 = smov (!%p1908_p1), 0  }
  0x8c LB: >> { %v758_v32 = vld [vmem:[%s2486_s8] sm:$0xff]  ;;  %v760_v33 = vld [vmem:[%s2486_s8 + $0x18] sm:$0xff]  ;;  %v762_v34 = vld [vmem:[%s2486_s8 + $0x30] sm:$0xff]  ;;  %s766_s14 = sadd.s32 1, %s2490_s9  ;;  %s752_s20 = sadd.s32 1, %s2494_s20   ;;  %s2494_s20 = sphi %s2492_s20, %s752_s20   ;;  %s2490_s9 = sphi %s2488_s9, %s2489_s9   ;;  %s2486_s8 = sphi %s3348_s8, %s771_s8   ;;  %s2482_s22 = sphi %s3347_s22, %s772_s22  }
  0x8d   : >> { %759 = vst [vmem:[%s2482_s22] sm:$0xff] %v758_v32  ;;  %761 = vst [vmem:[%s2482_s22 + $0x10] sm:$0xff] %v760_v33  ;;  %v764_v35 = vld [vmem:[%s2486_s8 + $0x48] sm:$0xff]  ;;  %p767_p2 = scmp.ge.s32.totalorder %s766_s14, %s2780_s16  ;;  %p751_p3 = scmp.ge.s32.totalorder %s752_s20, %s2780_s16 }
  0x8e   : >> { %763 = vst [vmem:[%s2482_s22 + $0x20] sm:$0xff] %v762_v34  ;;  %765 = vst [vmem:[%s2482_s22 + $0x30] sm:$0xff] %v764_v35 }
  0x8f   : >> { %s3381_s14 = smov (%p767_p2, %s766_s14), 0  ;;  %754 = sbr.rel (!%p751_p3) target bundleno = 140 (0x8c), region = 357 }
  0x90   : >> { %s1909_s11 = sshll.u32 %s3381_s14, 3  ;;  %s2489_s9 = smov %s3381_s14  }
  0x91   : >> { %s771_s8 = scalar_lea.vmem %s2784_s17, %s1909_s11   ;;  %s772_s22 = scalar_lea.vmem %s2787_s23, %s1909_s11 [#allocation4]  }
  0x94 PF: > { %p1911_p4 = scmp.ge.s32.totalorder %s2398_s28, 1  ;;  %p829_p6 = scmp.lt.s32.totalorder %s2398_s28, 3 }
  0x96   : > { %p830_p7 = pnand %p1911_p4, %p829_p6 }
  0x97   : > { %s836_s10 = sand.u32 (!%p830_p7), 1, %s2382_s24   ;;  %s1915_s12 = sshll.u32 (!%p830_p7), %s2390_s26, 1 }
  0x98   : > { %833 = sbr.rel (%p830_p7) target bundleno = 348 (0x15c), region = 192  ;;  %s1912_s19 = sshll.u32 (!%p830_p7), %s836_s10, 6 }
  0x99   : > { %p942_p8 = scmp.lt.s32.totalorder (!%p830_p7), %s1915_s12, 3  ;;  %s838_s10 = scalar_lea.vmem (!%p830_p7), [#allocation2], %s1912_s19 }
  0x9a   : > { %s2830_s15 = scalar_lea.vmem (!%p830_p7), [#allocation4], %s1912_s19  ;;  %p1923_p9 = scmp.ne.s32.totalorder (!%p830_p7), %s2390_s26, 0 }
  0x9d   : > { %s3383_s12 = smov (!%p942_p8, %s1915_s12), 3  ;;  %982 = sbr.rel (%p1923_p9) target bundleno = 164 (0xa4), region = 208 }
  0x9e   : > { %s1916_s18 = sshll.u32 %s3383_s12, 3  ;;  %s2828_s12 = scalar_lea.vmem [#allocation3], %s1912_s19 }
  0x9f   : > { %s945_s16 = scalar_lea.vmem %s3328_s3, %s1916_s18  ;;  %s2816_s22 = scalar_lea.vmem %s3329_s4, %s1916_s18 }
  0xa0   : > { %s2821_s20 = scalar_lea.vmem %s3330_s5, %s1916_s18  ;;  %s2826_s11 = scalar_lea.vmem %s3331_s6, %s1916_s18 }
  0xa2   : > { %v2496_v36 = vmov 0.0  }
  0xa3   : > { %983 = vst [vmem:[#allocation5] sm:$0xff] %v2496_v36  ;;  %984 = vst [vmem:[#allocation5 + $0x8] sm:$0xff] %v2496_v36 }
  0xa4 PF: > { %v1004_v37 = vld [vmem:[%s945_s16] sm:$0xff]  ;;  %v1007_v39 = vld [vmem:[%s838_s10 + $0x8] sm:$0xff]  ;;  %v1925_v43 = vld [vmem:[%s838_s10 + $0x10] sm:$0xff]  ;;  %s1924_s19 = sshll.u32 %s2390_s26, 4  ;;  %s2499_s26 = smov [#allocation5]  }
  0xa5   : > { %v1006_v38 = vld [vmem:[%s838_s10] sm:$0xff]  ;;  %v1005_v40 = vld [vmem:[%s945_s16 + $0x8] sm:$0xff]  ;;  %v1009_v42 = vmul.f32 %v1007_v39, %v1007_v39  ;;  %v1926_v44 = vld [vmem:[%s838_s10 + $0x18] sm:$0xff]  ;;  %v1021_v45 = vmul.f32 %v1925_v43, %v1925_v43  ;;  %vm1012_vm0 = vcmp.eq.s32.totalorder %v1004_v37, 0  ;;  %vm1025_vm2 = vcmp.eq.s32.totalorder %v1004_v37, 1  ;;  %s1576_s18 = sshll.u32 %s2499_s26, 4  ;;  %s1577_s18 = int_to_ptr.vmem [resolvable:$true] %s1576_s18 }
  0xa6   : > { %v1008_v41 = vmul.f32 %v1006_v38, %v1006_v38  ;;  %v1022_v46 = vmul.f32 %v1926_v44, %v1926_v44  ;;  %v1927_v47 = vld [vmem:[%s838_s10 + $0x20] sm:$0xff]  ;;  %v1928_v48 = vld [vmem:[%s838_s10 + $0x28] sm:$0xff]  ;;  %vm1013_vm1 = vcmp.eq.s32.totalorder %v1005_v40, 0  ;;  %vm1026_vm3 = vcmp.eq.s32.totalorder %v1005_v40, 1  ;;  %v1929_v51 = vld [vmem:[%s838_s10 + $0x30] sm:$0xff]  ;;  %p3295_p10 = scmp.eq.s32.totalorder %s1863_s29, 1  ;;  %p2243_p13 = scmp.lt.s32.totalorder %s1577_s18, %s1577_s18 }
  0xa7   : > { %v1034_v52 = vmul.f32 %v1927_v47, %v1927_v47  ;;  %v1035_v53 = vmul.f32 %v1928_v48, %v1928_v48  ;;  %v1930_v54 = vld [vmem:[%s838_s10 + $0x38] sm:$0xff]  ;;  %v1014_v55 = vsel %vm1012_vm0, %v1006_v38, 0.0  ;;  %v1015_v56 = vsel %vm1013_vm1, %v1007_v39, 0.0  ;;  %v1189_v1 = vld [vmem:[%s2828_s12] sm:$0xff]  ;;  %v1190_v2 = vld [vmem:[%s2828_s12 + $0x8] sm:$0xff]  ;;  %s2236_s16 = scalar_lea.vmem %s1577_s18, 256 }
  0xa8   : > { %v1023_v49 = vadd.f32 %v1021_v45, %v1008_v41  ;;  %v1024_v50 = vadd.f32 %v1022_v46, %v1009_v42  ;;  %v1027_v57 = vsel %vm1025_vm2, %v1925_v43, 0.0  ;;  %vm1038_vm4 = vcmp.eq.s32.totalorder %v1004_v37, 2  ;;  %v1931_v8 = vld [vmem:[%s2828_s12 + $0x10] sm:$0xff]  ;;  %v1932_v9 = vld [vmem:[%s2828_s12 + $0x18] sm:$0xff]  ;;  %v1933_v13 = vld [vmem:[%s2828_s12 + $0x20] sm:$0xff]  ;;  %p2237_p11 = scmp.ne.s32.totalorder %s1577_s18, %s2236_s16  ;;  %p2244_p0 = scmp.lt.s32.totalorder %s2236_s16, %s2236_s16 }
  0xa9   : > { %v1028_v58 = vsel %vm1026_vm3, %v1926_v44, 0.0  ;;  %v1047_v61 = vmul.f32 %v1929_v51, %v1929_v51  ;;  %vm1039_vm5 = vcmp.eq.s32.totalorder %v1005_v40, 2  ;;  %v1048_v62 = vmul.f32 %v1930_v54, %v1930_v54  ;;  %v1934_v14 = vld [vmem:[%s2828_s12 + $0x28] sm:$0xff]  ;;  %v1187_v16 = vld [vmem:[%s2816_s22] sm:$0xff]  ;;  %v1935_v21 = vld [vmem:[%s2828_s12 + $0x30] sm:$0xff] }
  0xaa   : > { %v1036_v59 = vadd.f32 %v1034_v52, %v1023_v49  ;;  %v1037_v60 = vadd.f32 %v1035_v53, %v1024_v50  ;;  %v1029_v63 = vadd.f32 %v1027_v57, %v1014_v55  ;;  %v1030_v3 = vadd.f32 %v1028_v58, %v1015_v56  ;;  %v1188_v18 = vld [vmem:[%s2816_s22 + $0x8] sm:$0xff]  ;;  %v1936_v28 = vld [vmem:[%s2828_s12 + $0x38] sm:$0xff]  ;;  %v1374_v49 = vld [vmem:[%s2830_s15] sm:$0xff]  ;;  %p2238_p5 = pnand %p2237_p11, %p3295_p10  ;;  %p2245_p1 = por %p2244_p0, %p2243_p13 }
  0xab   : > { %v1040_v4 = vsel %vm1038_vm4, %v1927_v47, 0.0  ;;  %v1041_v6 = vsel %vm1039_vm5, %v1928_v48, 0.0  ;;  %vm1051_vm6 = vcmp.eq.s32.totalorder %v1004_v37, 3  ;;  %vm1052_vm7 = vcmp.eq.s32.totalorder %v1005_v40, 3  ;;  %v1937_v50 = vld [vmem:[%s2830_s15 + $0x10] sm:$0xff] }
  0xac   : > { %v1049_v0 = vadd.f32 %v1047_v61, %v1036_v59  ;;  %v1050_v5 = vadd.f32 %v1048_v62, %v1037_v60  ;;  %v1191_v11 = vmul.f32 %v1189_v1, %v1189_v1  ;;  %v1192_v12 = vmul.f32 %v1190_v2, %v1190_v2  ;;  %v1375_v59 = vld [vmem:[%s2830_s15 + $0x8] sm:$0xff]  ;;  %p2239_p12 = pneg %p2238_p5 }
  0xad   : > { %v1042_v15 = vadd.f32 %v1040_v4, %v1029_v63  ;;  %v1043_v17 = vadd.f32 %v1041_v6, %v1030_v3  ;;  %v1204_v19 = vmul.f32 %v1931_v8, %v1931_v8  ;;  %v1205_v20 = vmul.f32 %v1932_v9, %v1932_v9  ;;  %v1938_v63 = vld [vmem:[%s2830_s15 + $0x18] sm:$0xff] }
  0xae   : > { %v1057_v7 = vmax.f32 %v1049_v0, 1e-16  ;;  %v1058_v10 = vmax.f32 %v1050_v5, 1e-16  ;;  %v1053_v22 = vsel %vm1051_vm6, %v1929_v51, 0.0  ;;  %v1054_v23 = vsel %vm1052_vm7, %v1930_v54, 0.0  ;;  %p2246_p2 = pnand %p2245_p1, %p2239_p12 }
  0xaf   : > { %v1217_v24 = vmul.f32 %v1933_v13, %v1933_v13  ;;  %v1218_v25 = vmul.f32 %v1934_v14, %v1934_v14  ;;  %vm1195_vm8 = vcmp.eq.s32.totalorder %v1187_v16, 0  ;;  %v1206_v26 = vadd.f32 %v1204_v19, %v1191_v11  ;;  %v1939_v0 = vld [vmem:[%s2830_s15 + $0x20] sm:$0xff]  ;;  %v1940_v11 = vld [vmem:[%s2830_s15 + $0x28] sm:$0xff] }
  0xb0   : > { %2200 = vrsqrt.f32 %v1057_v7  ;;  %v1207_v27 = vadd.f32 %v1205_v20, %v1192_v12  ;;  %vm1208_vm9 = vcmp.eq.s32.totalorder %v1187_v16, 1  ;;  %vm1196_vm10 = vcmp.eq.s32.totalorder %v1188_v18, 0 }
  0xb1   : > { %2202 = vrsqrt.f32 %v1058_v10  ;;  %vm1209_vm11 = vcmp.eq.s32.totalorder %v1188_v18, 1  ;;  %v1230_v29 = vmul.f32 %v1935_v21, %v1935_v21  ;;  %v1055_v30 = vadd.f32 %v1053_v22, %v1042_v15 }
  0xb2   : > { %v1219_v31 = vadd.f32 %v1217_v24, %v1206_v26  ;;  %v1220_v32 = vadd.f32 %v1218_v25, %v1207_v27  ;;  %v1056_v33 = vadd.f32 %v1054_v23, %v1043_v17  ;;  %v1197_v34 = vsel %vm1195_vm8, %v1189_v1, 0.0  ;;  %v1373_v26 = vld [vmem:[%s2821_s20 + $0x8] sm:$0xff] }
  0xb3   : > { %v1210_v35 = vsel %vm1208_vm9, %v1931_v8, 0.0  ;;  %v1231_v36 = vmul.f32 %v1936_v28, %v1936_v28  ;;  %v1198_v37 = vsel %vm1196_vm10, %v1190_v2, 0.0  ;;  %v1211_v38 = vsel %vm1209_vm11, %v1932_v9, 0.0 }
  0xb4   : > { %vm1221_vm12 = vcmp.eq.s32.totalorder %v1187_v16, 2  ;;  %v1232_v39 = vadd.f32 %v1230_v29, %v1219_v31  ;;  %vm1222_vm13 = vcmp.eq.s32.totalorder %v1188_v18, 2  ;;  %v1212_v41 = vadd.f32 %v1210_v35, %v1197_v34 }
  0xb5   : > { %v1233_v40 = vadd.f32 %v1231_v36, %v1220_v32  ;;  %v1061_v43 = vmul.f32 0.999998, %v1055_v30  ;;  %v1213_v44 = vadd.f32 %v1211_v38, %v1198_v37  ;;  %v1223_v45 = vsel %vm1221_vm12, %v1933_v13, 0.0 }
  0xb6   : > { %v1240_v42 = vmax.f32 %v1232_v39, 1e-16  ;;  %v1062_v47 = vmul.f32 0.999998, %v1056_v33  ;;  %v1224_v48 = vsel %vm1222_vm13, %v1934_v14, 0.0  ;;  %vm1234_vm14 = vcmp.eq.s32.totalorder %v1187_v16, 3 }
  0xb7   : > { %v1241_v46 = vmax.f32 %v1233_v40, 1e-16  ;;  %vm1235_vm15 = vcmp.eq.s32.totalorder %v1188_v18, 3  ;;  %v1225_v52 = vadd.f32 %v1223_v45, %v1212_v41  ;;  %v1226_v55 = vadd.f32 %v1224_v48, %v1213_v44  ;;  %v2856_v14 = vld [vmem:[%s2830_s15 + $0x30] sm:$0xff]  ;;  %v2861_v16 = vld [vmem:[%s2821_s20] sm:$0xff] }
  0xb8   : > { %2204 = vrsqrt.f32 %v1240_v42  ;;  %v1236_v56 = vsel %vm1234_vm14, %v1935_v21, 0.0  ;;  %v1237_v58 = vsel %vm1235_vm15, %v1936_v28, 0.0  ;;  %v1376_v60 = vmul.f32 %v1374_v49, %v1374_v49  ;;  %v2864_v21 = vld [vmem:[%s2830_s15 + $0x38] sm:$0xff] }
  0xb9   : > { %2206 = vrsqrt.f32 %v1241_v46  ;;  %v1389_v61 = vmul.f32 %v1937_v50, %v1937_v50  ;;  %v1238_v2 = vadd.f32 %v1236_v56, %v1225_v52  ;;  %v1239_v4 = vadd.f32 %v1237_v58, %v1226_v55 }
  0xba   : > { %v1377_v5 = vmul.f32 %v1375_v59, %v1375_v59  ;;  %v1390_v7 = vmul.f32 %v1938_v63, %v1938_v63  ;;  %v1402_v9 = vmul.f32 %v1939_v0, %v1939_v0  ;;  %v1403_v18 = vmul.f32 %v1940_v11, %v1940_v11 }
  0xbb   : > { %v1391_v8 = vadd.f32 %v1389_v61, %v1376_v60  ;;  %v1244_v13 = vmul.f32 0.999998, %v1238_v2  ;;  %v1245_v15 = vmul.f32 0.999998, %v1239_v4  ;;  %v1415_v22 = vmul.f32 %v2856_v14, %v2856_v14 }
  0xbc   : > { %v1392_v17 = vadd.f32 %v1390_v7, %v1377_v5  ;;  %vm1380_vm0 = vcmp.eq.s32.totalorder %v2861_v16, 0  ;;  %vm1393_vm1 = vcmp.eq.s32.totalorder %v2861_v16, 1  ;;  %v1416_v29 = vmul.f32 %v2864_v21, %v2864_v21 }
  0xbd   : > { %v2201_v51 = vpop.eup %2200  ;;  %v1404_v19 = vadd.f32 %v1402_v9, %v1391_v8  ;;  %vm1381_vm2 = vcmp.eq.s32.totalorder %v1373_v26, 0  ;;  %v1382_v34 = vsel %vm1380_vm0, %v1374_v49, 0.0  ;;  %vm1394_vm3 = vcmp.eq.s32.totalorder %v1373_v26, 1 }
  0xbe   : > { %v2203_v53 = vpop.eup %2202  ;;  %v1063_v54 = vmul.f32 %v2201_v51, %v1061_v43  ;;  %v1405_v28 = vadd.f32 %v1403_v18, %v1392_v17  ;;  %v1395_v35 = vsel %vm1393_vm1, %v1937_v50, 0.0  ;;  %vm1406_vm4 = vcmp.eq.s32.totalorder %v2861_v16, 2 }
  0xbf   : > { %v1064_v57 = vmul.f32 %v2203_v53, %v1062_v47  ;;  %v1417_v30 = vadd.f32 %v1415_v22, %v1404_v19  ;;  %v1383_v40 = vsel %vm1381_vm2, %v1375_v59, 0.0  ;;  %v1396_v41 = vsel %vm1394_vm3, %v1938_v63, 0.0 }
  0xc0   : > { %v1065_v62 = vmul.f32 %v1063_v54, %v1063_v54  ;;  %v1418_v37 = vadd.f32 %v1416_v29, %v1405_v28  ;;  %v1397_v42 = vadd.f32 %v1395_v35, %v1382_v34  ;;  %vm1407_vm5 = vcmp.eq.s32.totalorder %v1373_v26, 2 }
  0xc1   : > { %v1066_v1 = vmul.f32 %v1064_v57, %v1064_v57  ;;  %v1425_v38 = vmax.f32 %v1417_v30, 1e-16  ;;  %v2887_v43 = vadd.f32 1.0, %v1063_v54  ;;  %v2889_v44 = vadd.f32 1.0, %v1064_v57 }
  0xc2   : > { %v1067_v3 = vsub.f32 1.0, %v1065_v62  ;;  %v1408_v45 = vsel %vm1406_vm4, %v1939_v0, 0.0  ;;  %v1426_v48 = vmax.f32 %v1418_v37, 1e-16  ;;  %v1398_v53 = vadd.f32 %v1396_v41, %v1383_v40 }
  0xc3   : > { %v1068_v6 = vsub.f32 1.0, %v1066_v1  ;;  %vm1419_vm10 = vcmp.eq.s32.totalorder %v2861_v16, 3  ;;  %v2903_v55 = vand.u32 2147483647, %v2887_v43  ;;  %v1409_v56 = vsel %vm1407_vm5, %v1940_v11, 0.0 }
  0xc4   : > { %v2850_v10 = vmax.f32 %v1067_v3, 0.0  ;;  %v1410_v57 = vadd.f32 %v1408_v45, %v1397_v42  ;;  %v2910_v60 = vand.u32 2147483647, %v2889_v44  ;;  %vm1420_vm11 = vcmp.eq.s32.totalorder %v1373_v26, 3 }
  0xc5   : > { %v2853_v12 = vmax.f32 %v1068_v6, 0.0  ;;  %v2205_v20 = vpop.eup %2204  ;;  %v1421_v63 = vsel %vm1419_vm10, %v2856_v14, 0.0  ;;  %v1411_v2 = vadd.f32 %v1409_v56, %v1398_v53  ;;  %v1422_v4 = vsel %vm1420_vm11, %v2864_v21, 0.0 }
  0xc6   : > { %2208 = vrsqrt.f32 %v2850_v10  ;;  %v2207_v23 = vpop.eup %2206  ;;  %v2868_v24 = vmul.f32 %v2205_v20, %v1244_v13  ;;  %vm1073_vm6 = vcmp.eq.f32.partialorder %v2850_v10, inf  ;;  %v1076_v47 = vand.u32 2147483648, %v2850_v10 }
  0xc7   : > { %2210 = vrsqrt.f32 %v2853_v12  ;;  %v2870_v25 = vmul.f32 %v2207_v23, %v1245_v15  ;;  %vm1075_vm7 = vcmp.eq.f32.partialorder %v2850_v10, 0.0  ;;  %vm1080_vm8 = vcmp.eq.f32.partialorder %v2853_v12, inf }
  0xc8   : > { %v1248_v27 = vmul.f32 %v2868_v24, %v2868_v24  ;;  %v1083_v51 = vand.u32 2147483648, %v2853_v12  ;;  %vm1082_vm9 = vcmp.eq.f32.partialorder %v2853_v12, 0.0  ;;  %v1423_v5 = vadd.f32 %v1421_v63, %v1410_v57 }
  0xc9   : > { %v1249_v31 = vmul.f32 %v2870_v25, %v2870_v25  ;;  %v2927_v6 = vadd.f32 1.0, %v2868_v24  ;;  %v2930_v7 = vadd.f32 1.0, %v2870_v25  ;;  %vm1117_vm4 = vcmp.lt.s32.totalorder %v2887_v43, 0 }
  0xca   : > { %v1250_v32 = vsub.f32 1.0, %v1248_v27  ;;  %v1429_v14 = vmul.f32 0.999998, %v1423_v5  ;;  %vm1114_vm5 = vcmp.lt.f32.partialorder %v2887_v43, 0.0 }
  0xcb   : > { %v1251_v33 = vsub.f32 1.0, %v1249_v31  ;;  %v2942_v18 = vand.u32 2147483647, %v2927_v6  ;;  %v2948_v21 = vand.u32 2147483647, %v2930_v7  ;;  %vm1300_vm10 = vcmp.lt.s32.totalorder %v2927_v6, 0 }
  0xcc   : > { %v2881_v36 = vmax.f32 %v1250_v32, 0.0  ;;  %vm1347_vm11 = vcmp.lt.s32.totalorder %v2930_v7, 0 }
  0xcd   : > { %v2884_v39 = vmax.f32 %v1251_v33, 0.0 }
  0xce   : > { %2212 = vrsqrt.f32 %v2881_v36  ;;  %vm1256_vm12 = vcmp.eq.f32.partialorder %v2881_v36, inf  ;;  %vm1258_vm13 = vcmp.eq.f32.partialorder %v2881_v36, 0.0  ;;  %v1259_v9 = vand.u32 2147483648, %v2881_v36 }
  0xcf   : > { %2214 = vrsqrt.f32 %v2884_v39  ;;  %vm1263_vm14 = vcmp.eq.f32.partialorder %v2884_v39, inf  ;;  %v1266_v13 = vand.u32 2147483648, %v2884_v39  ;;  %vm1265_vm15 = vcmp.eq.f32.partialorder %v2884_v39, 0.0 }
  0xd0   : > { %2216 = vrsqrt.f32 %v1425_v38 }
  0xd1   : > { %2218 = vrsqrt.f32 %v1426_v48 }
  0xd3   : > { %v2209_v46 = vpop.eup %2208 }
  0xd4   : > { %v2211_v49 = vpop.eup %2210  ;;  %v1072_v50 = vmul.f32 %v2209_v46, %v2850_v10 }
  0xd5   : > { %v1079_v52 = vmul.f32 %v2211_v49, %v2853_v12 }
  0xd6   : > { %v1074_v54 = vsel %vm1073_vm6, %v2850_v10, %v1072_v50  ;;  %v1424_v10 = vadd.f32 %v1422_v4, %v1411_v2  ;;  %vm1164_vm6 = vcmp.lt.s32.totalorder %v2889_v44, 0 }
  0xd7   : > { %v2906_v58 = vsel %vm1075_vm7, %v1076_v47, %v1074_v54  ;;  %v1081_v59 = vsel %vm1080_vm8, %v2853_v12, %v1079_v52  ;;  %vm1121_vm7 = vcmp.ne.f32.partialorder %v2887_v43, %v2887_v43  ;;  %vm1161_vm8 = vcmp.lt.f32.partialorder %v2889_v44, 0.0 }
  0xd8   : > { %v2912_v61 = vsel %vm1082_vm9, %v1083_v51, %v1081_v59  ;;  %v2915_v62 = vand.u32 2147483647, %v2906_v58  ;;  %v1430_v24 = vmul.f32 0.999998, %v1424_v10  ;;  %vm1168_vm9 = vcmp.ne.f32.partialorder %v2889_v44, %v2889_v44 }
  0xd9   : > { %v2919_v0 = vand.u32 2147483647, %v2912_v61 }
  0xda   : > { %v1090_v1 = vmax.f32 %v2903_v55, %v2915_v62  ;;  %v1089_v29 = vmin.f32 %v2903_v55, %v2915_v62 }
  0xdb   : > { %v1137_v3 = vmax.f32 %v2910_v60, %v2919_v0  ;;  %v2213_v8 = vpop.eup %2212  ;;  %v1136_v31 = vmin.f32 %v2910_v60, %v2919_v0 }
  0xdc   : > { %2220 = vrcp.f32 %v1090_v1  ;;  %v2215_v11 = vpop.eup %2214  ;;  %v1255_v12 = vmul.f32 %v2213_v8, %v2881_v36 }
  0xdd   : > { %2222 = vrcp.f32 %v1137_v3  ;;  %v2217_v15 = vpop.eup %2216  ;;  %v1262_v16 = vmul.f32 %v2215_v11, %v2884_v39 }
  0xde   : > { %v1257_v17 = vsel %vm1256_vm12, %v2881_v36, %v1255_v12  ;;  %v1431_v25 = vmul.f32 %v2217_v15, %v1429_v14  ;;  %v2219_v26 = vpop.eup %2218  ;;  %vm1127_vm12 = vcmp.eq.s32.totalorder %v2903_v55, inf }
  0xdf   : > { %v2944_v19 = vsel %vm1258_vm13, %v1259_v9, %v1257_v17  ;;  %v1264_v20 = vsel %vm1263_vm14, %v2884_v39, %v1262_v16  ;;  %v1432_v32 = vmul.f32 %v2219_v26, %v1430_v24  ;;  %vm1297_vm13 = vcmp.lt.f32.partialorder %v2927_v6, 0.0 }
  0xe0   : > { %v2950_v22 = vsel %vm1265_vm15, %v1266_v13, %v1264_v20  ;;  %v2953_v23 = vand.u32 2147483647, %v2944_v19  ;;  %v1433_v33 = vmul.f32 %v1431_v25, %v1431_v25  ;;  %v2988_v2 = vadd.f32 1.0, %v1431_v25 }
  0xe1   : > { %v2956_v27 = vand.u32 2147483647, %v2950_v22  ;;  %v1434_v35 = vmul.f32 %v1432_v32, %v1432_v32  ;;  %v3002_v11 = vadd.f32 1.0, %v1432_v32  ;;  %vm1174_vm14 = vcmp.eq.s32.totalorder %v2910_v60, inf }
  0xe2   : > { %v1273_v28 = vmax.f32 %v2942_v18, %v2953_v23  ;;  %v1435_v36 = vsub.f32 1.0, %v1433_v33  ;;  %v1272_v51 = vmin.f32 %v2942_v18, %v2953_v23  ;;  %v3006_v14 = vand.u32 2147483647, %v2988_v2 }
  0xe3   : > { %v1320_v30 = vmax.f32 %v2948_v21, %v2956_v27  ;;  %v1436_v40 = vsub.f32 1.0, %v1434_v35  ;;  %v1319_v53 = vmin.f32 %v2948_v21, %v2956_v27  ;;  %vm1111_vm15 = vcmp.gt.f32.partialorder %v2915_v62, %v2903_v55 }
  0xe4   : > { %2224 = vrcp.f32 %v1273_v28  ;;  %v1437_v41 = vmax.f32 %v1435_v36, 0.0 }
  0xe5   : > { %2226 = vrcp.f32 %v1320_v30  ;;  %v1438_v46 = vmax.f32 %v1436_v40, 0.0 }
  0xe6   : > { %2228 = vrsqrt.f32 %v1437_v41  ;;  %vm1441_vm0 = vcmp.eq.f32.partialorder %v1437_v41, inf  ;;  %v1444_v20 = vand.u32 2147483648, %v1437_v41  ;;  %vm1443_vm1 = vcmp.eq.f32.partialorder %v1437_v41, 0.0 }
  0xe7   : > { %2230 = vrsqrt.f32 %v1438_v46  ;;  %vm1448_vm2 = vcmp.eq.f32.partialorder %v1438_v46, inf  ;;  %vm1450_vm3 = vcmp.eq.f32.partialorder %v1438_v46, 0.0  ;;  %v1451_v40 = vand.u32 2147483648, %v1438_v46 }
  0xe9   : > { %v2221_v34 = vpop.eup %2220 }
  0xea   : > { %v2223_v37 = vpop.eup %2222  ;;  %v2966_v38 = vmul.f32 %v2221_v34, %v1089_v29 }
  0xeb   : > { %v2968_v39 = vmul.f32 %v2223_v37, %v1136_v31 }
  0xec   : > { %v2972_v42 = vmul.f32 %v2966_v38, %v2966_v38 }
  0xed   : > { %v2976_v45 = vmul.f32 %v2968_v39, %v2968_v39 }
  0xee   : > { %v1094_v47 = vmul.f32 0.002785687, %v2972_v42 }
  0xef   : > { %v1141_v48 = vmul.f32 0.002785687, %v2976_v45 }
  0xf0   : > { %v1095_v49 = vadd.f32 -0.015866, %v1094_v47 }
  0xf1   : > { %v1142_v50 = vadd.f32 -0.015866, %v1141_v48  ;;  %v2225_v56 = vpop.eup %2224 }
  0xf2   : > { %v1096_v52 = vmul.f32 %v1095_v49, %v2972_v42  ;;  %v2227_v59 = vpop.eup %2226  ;;  %v2986_v1 = vmul.f32 %v2225_v56, %v1272_v51 }
  0xf3   : > { %v1143_v54 = vmul.f32 %v1142_v50, %v2976_v45  ;;  %v2991_v4 = vmul.f32 %v2227_v59, %v1319_v53  ;;  %v2229_v15 = vpop.eup %2228 }
  0xf4   : > { %v1097_v57 = vadd.f32 0.04247222, %v1096_v52  ;;  %v2996_v8 = vmul.f32 %v2986_v1, %v2986_v1  ;;  %v1440_v26 = vmul.f32 %v2229_v15, %v1437_v41  ;;  %v2231_v28 = vpop.eup %2230 }
  0xf5   : > { %v1144_v63 = vadd.f32 0.04247222, %v1143_v54  ;;  %v3000_v10 = vmul.f32 %v2991_v4, %v2991_v4  ;;  %v1447_v34 = vmul.f32 %v2231_v28, %v1438_v46  ;;  %v2497_v28 = vmov 0.0  }
  0xf6   : > { %v1098_v3 = vmul.f32 %v1097_v57, %v2972_v42  ;;  %v1277_v13 = vmul.f32 0.002785687, %v2996_v8  ;;  %v1442_v33 = vsel %vm1441_vm0, %v1437_v41, %v1440_v26  ;;  %vm1119_vm0 = vcmp.eq.f32.partialorder %v2906_v58, 0.0 }
  0xf7   : > { %v1145_v5 = vmul.f32 %v1144_v63, %v2976_v45  ;;  %v1324_v17 = vmul.f32 0.002785687, %v3000_v10  ;;  %v3014_v37 = vsel %vm1443_vm1, %v1444_v20, %v1442_v33  ;;  %v1449_v49 = vsel %vm1448_vm2, %v1438_v46, %v1447_v34 }
  0xf8   : > { %v1099_v9 = vadd.f32 -0.074975304, %v1098_v3  ;;  %v1278_v25 = vadd.f32 -0.015866, %v1277_v13  ;;  %v3018_v50 = vand.u32 2147483647, %v3014_v37  ;;  %v3026_v59 = vsel %vm1450_vm3, %v1451_v40, %v1449_v49 }
  0xf9   : > { %v1146_v12 = vadd.f32 -0.074975304, %v1145_v5  ;;  %v1325_v30 = vadd.f32 -0.015866, %v1324_v17  ;;  %v3030_v5 = vand.u32 2147483647, %v3002_v11  ;;  %vm1158_vm1 = vcmp.gt.f32.partialorder %v2919_v0, %v2910_v60 }
  0xfa   : > { %v1100_v16 = vmul.f32 %v1099_v9, %v2972_v42  ;;  %v1279_v32 = vmul.f32 %v1278_v25, %v2996_v8  ;;  %v1458_v54 = vmax.f32 %v3006_v14, %v3018_v50  ;;  %v2498_v34 = vmov 0.7853982  }
  0xfb   : > { %v1147_v24 = vmul.f32 %v1146_v12, %v2976_v45  ;;  %v1326_v36 = vmul.f32 %v1325_v30, %v3000_v10  ;;  %v1165_v49 = vsel %vm1164_vm6, 3.1415927, %v2497_v28  ;;  %vm1122_vm2 = vcmp.ne.f32.partialorder %v2906_v58, %v2906_v58 }
  0xfc   : > { %v1101_v29 = vadd.f32 0.1064488, %v1100_v16  ;;  %v1280_v48 = vadd.f32 0.04247222, %v1279_v32  ;;  %2232 = vrcp.f32 %v1458_v54  ;;  %v3035_v16 = vand.u32 2147483647, %v3026_v59 }
  0xfd   : > { %v1148_v31 = vadd.f32 0.1064488, %v1147_v24  ;;  %v1327_v52 = vadd.f32 0.04247222, %v1326_v36  ;;  %v3079_v54 = vsel %vm1300_vm10, 3.1415927, %v2497_v28  ;;  %vm1169_vm3 = vcmp.ne.f32.partialorder %v2912_v61, %v2912_v61 }
  0xfe   : > { %v1102_v35 = vmul.f32 %v1101_v29, %v2972_v42  ;;  %v1281_v41 = vmul.f32 %v1280_v48, %v2996_v8  ;;  %v1505_v25 = vmax.f32 %v3030_v5, %v3035_v16  ;;  %v3044_v29 = vsel %vm1117_vm4, 3.1415927, %v2497_v28 }
  0xff   : > { %v1149_v47 = vmul.f32 %v1148_v31, %v2976_v45  ;;  %v1328_v57 = vmul.f32 %v1327_v52, %v3000_v10  ;;  %vm1304_vm4 = vcmp.ne.f32.partialorder %v2927_v6, %v2927_v6  ;;  %vm1166_vm6 = vcmp.eq.f32.partialorder %v2912_v61, 0.0 }
 0x100   : > { %v1103_v51 = vadd.f32 -0.14207031, %v1102_v35  ;;  %v1282_v3 = vadd.f32 -0.074975304, %v1281_v41  ;;  %2234 = vrcp.f32 %v1505_v25  ;;  %v3054_v35 = vsel %vm1114_vm5, 2.3561945, %v2498_v34 }
 0x101   : > { %v1150_v53 = vadd.f32 -0.14207031, %v1149_v47  ;;  %v1329_v12 = vadd.f32 -0.074975304, %v1328_v57  ;;  %vm1351_vm10 = vcmp.ne.f32.partialorder %v2930_v7, %v2930_v7  ;;  %v1362_v6 = vand.u32 2147483648, %v2950_v22 }
 0x102   : > { %v1104_v56 = vmul.f32 %v1103_v51, %v2972_v42  ;;  %v1283_v15 = vmul.f32 %v1282_v3, %v2996_v8 }
 0x103   : > { %v1151_v63 = vmul.f32 %v1150_v53, %v2976_v45  ;;  %v1330_v17 = vmul.f32 %v1329_v12, %v3000_v10  ;;  %v1457_v53 = vmin.f32 %v3006_v14, %v3018_v50 }
 0x104   : > { %v1105_v9 = vadd.f32 0.19993454, %v1104_v56  ;;  %v1284_v24 = vadd.f32 0.1064488, %v1283_v15  ;;  %v3084_v56 = vsel %vm1297_vm13, 2.3561945, %v2498_v34 }
 0x105   : > { %v1152_v13 = vadd.f32 0.19993454, %v1151_v63  ;;  %v1331_v30 = vadd.f32 0.1064488, %v1330_v17 }
 0x106   : > { %v1106_v46 = vmul.f32 %v1105_v9, %v2972_v42  ;;  %v1285_v32 = vmul.f32 %v1284_v24, %v2996_v8 }
 0x107   : > { %v1153_v20 = vmul.f32 %v1152_v13, %v2976_v45  ;;  %v1332_v36 = vmul.f32 %v1331_v30, %v3000_v10 }
 0x108   : > { %v1107_v26 = vadd.f32 -0.33333147, %v1106_v46  ;;  %v1286_v47 = vadd.f32 -0.14207031, %v1285_v32 }
 0x109   : > { %v1154_v31 = vadd.f32 -0.33333147, %v1153_v20  ;;  %v1333_v51 = vadd.f32 -0.14207031, %v1332_v36  ;;  %v2233_v9 = vpop.eup %2232  ;;  %v1132_v20 = vand.u32 2147483648, %v2906_v58  ;;  %v1504_v36 = vmin.f32 %v3030_v5, %v3035_v16 }
 0x10a   : > { %v1108_v33 = vmul.f32 %v1107_v26, %v2972_v42  ;;  %v3064_v42 = vsel %vm1161_vm8, 2.3561945, %v2498_v34  ;;  %v1287_v52 = vmul.f32 %v1286_v47, %v2996_v8  ;;  %v3099_v17 = vmul.f32 %v2233_v9, %v1457_v53 }
 0x10b   : > { %v1155_v40 = vmul.f32 %v1154_v31, %v2976_v45  ;;  %v1334_v57 = vmul.f32 %v1333_v51, %v3000_v10 }
 0x10c   : > { %v1109_v48 = vmul.f32 %v1108_v33, %v2966_v38  ;;  %v1288_v3 = vadd.f32 0.19993454, %v1287_v52  ;;  %v3109_v31 = vmul.f32 %v3099_v17, %v3099_v17 }
 0x10d   : > { %v1156_v45 = vmul.f32 %v1155_v40, %v2968_v39  ;;  %v1335_v13 = vadd.f32 0.19993454, %v1334_v57 }
 0x10e   : > { %v1110_v41 = vadd.f32 %v1109_v48, %v2966_v38  ;;  %v3091_v38 = vsel %vm1347_vm11, 3.1415927, %v2497_v28  ;;  %v1289_v46 = vmul.f32 %v1288_v3, %v2996_v8  ;;  %vm3124_vm11 = vmor %vm1121_vm7, %vm1122_vm2  ;;  %v1462_v51 = vmul.f32 0.002785687, %v3109_v31 }
 0x10f   : > { %v1157_v63 = vadd.f32 %v1156_v45, %v2968_v39  ;;  %v1336_v24 = vmul.f32 %v1335_v13, %v3000_v10  ;;  %v2235_v45 = vpop.eup %2234  ;;  %vm1175_vm7 = vcmp.eq.s32.totalorder %v2919_v0, inf  ;;  %vm1344_vm2 = vcmp.lt.f32.partialorder %v2930_v7, 0.0 }
 0x110   : > { %v1112_v12 = vsub.f32 1.5707964, %v1110_v41  ;;  %v1290_v30 = vadd.f32 -0.33333147, %v1289_v46  ;;  %v1463_v44 = vadd.f32 -0.015866, %v1462_v51 }
 0x111   : > { %v1159_v15 = vsub.f32 1.5707964, %v1157_v63  ;;  %v1337_v33 = vadd.f32 -0.33333147, %v1336_v24 }
 0x112   : > { %v1113_v39 = vsel %vm1111_vm15, %v1112_v12, %v1110_v41  ;;  %vm1128_vm15 = vcmp.eq.s32.totalorder %v2915_v62, inf  ;;  %v1291_v48 = vmul.f32 %v1290_v30, %v2996_v8  ;;  %v1179_v41 = vand.u32 2147483648, %v2912_v61 }
 0x113   : > { %v1115_v25 = vsub.f32 3.1415927, %v1113_v39  ;;  %v1160_v26 = vsel %vm1158_vm1, %v1159_v15, %v1157_v63  ;;  %vm1310_vm1 = vcmp.eq.s32.totalorder %v2942_v18, inf  ;;  %v1338_v53 = vmul.f32 %v1337_v33, %v3000_v10 }
 0x114   : > { %v1162_v32 = vsub.f32 3.1415927, %v1160_v26  ;;  %v1292_v57 = vmul.f32 %v1291_v48, %v2986_v1  ;;  %v3163_v10 = vmul.f32 %v2235_v45, %v1504_v36  ;;  %v1464_v55 = vmul.f32 %v1463_v44, %v3109_v31 }
 0x115   : > { %v1116_v40 = vsel %vm1114_vm5, %v1115_v25, %v1113_v39  ;;  %vm3143_vm5 = vmor %vm1168_vm9, %vm1169_vm3  ;;  %vm1302_vm9 = vcmp.eq.f32.partialorder %v2944_v19, 0.0  ;;  %v1339_v0 = vmul.f32 %v1338_v53, %v2991_v4  ;;  %v1315_v36 = vand.u32 2147483648, %v2944_v19 }
 0x116   : > { %v1120_v52 = vsel %vm1119_vm0, %v3044_v29, %v1116_v40  ;;  %v1163_v43 = vsel %vm1161_vm8, %v1162_v32, %v1160_v26  ;;  %vm1357_vm0 = vcmp.eq.s32.totalorder %v2948_v21, inf  ;;  %vm1129_vm8 = vmand %vm1127_vm12, %vm1128_vm15  ;;  %vm1294_vm12 = vcmp.gt.f32.partialorder %v2953_v23, %v2942_v18 }
 0x117   : > { %v1167_v29 = vsel %vm1166_vm6, %v1165_v49, %v1163_v43  ;;  %v1124_v63 = vsel %vm3124_vm11, nan, %v1120_v52  ;;  %vm1176_vm3 = vmand %vm1174_vm14, %vm1175_vm7  ;;  %v1293_v49 = vadd.f32 %v1292_v57, %v2986_v1  ;;  %vm1305_vm6 = vcmp.ne.f32.partialorder %v2944_v19, %v2944_v19 }
 0x118   : > { %v1171_v61 = vsel %vm3143_vm5, nan, %v1167_v29  ;;  %v1340_v62 = vadd.f32 %v1339_v0, %v2991_v4  ;;  %vm1349_vm11 = vcmp.eq.f32.partialorder %v2950_v22, 0.0  ;;  %v3179_v3 = vmul.f32 %v3163_v10, %v3163_v10 }
 0x119   : > { %v1130_v60 = vsel %vm1129_vm8, %v3054_v35, %v1124_v63  ;;  %v1295_v9 = vsub.f32 1.5707964, %v1293_v49  ;;  %vm1341_vm14 = vcmp.gt.f32.partialorder %v2956_v27, %v2948_v21  ;;  %v1465_v1 = vadd.f32 0.04247222, %v1464_v55  ;;  %vm3197_vm8 = vmor %vm1304_vm4, %vm1305_vm6 }
 0x11a   : > { %v1177_v12 = vsel %vm1176_vm3, %v3064_v42, %v1171_v61  ;;  %v1342_v13 = vsub.f32 1.5707964, %v1340_v62  ;;  %vm1352_vm15 = vcmp.ne.f32.partialorder %v2950_v22, %v2950_v22  ;;  %v1509_v4 = vmul.f32 0.002785687, %v3179_v3 }
 0x11b   : > { %v1296_v15 = vsel %vm1294_vm12, %v1295_v9, %v1293_v49  ;;  %vm1311_vm5 = vcmp.eq.s32.totalorder %v2953_v23, inf  ;;  %vm1358_vm7 = vcmp.eq.s32.totalorder %v2956_v27, inf  ;;  %v1466_v35 = vmul.f32 %v1465_v1, %v3109_v31  ;;  %vm3204_vm3 = vmor %vm1351_vm10, %vm1352_vm15 }
 0x11c   : > { %v1131_v46 = vand.u32 2147483647, %v1130_v60  ;;  %v1298_v39 = vsub.f32 3.1415927, %v1296_v15  ;;  %v1343_v24 = vsel %vm1341_vm14, %v1342_v13, %v1340_v62  ;;  %v1510_v25 = vadd.f32 -0.015866, %v1509_v4  ;;  %vm1312_vm4 = vmand %vm1310_vm1, %vm1311_vm5 }
 0x11d   : > { %v1178_v26 = vand.u32 2147483647, %v1177_v12  ;;  %v1345_v23 = vsub.f32 3.1415927, %v1343_v24  ;;  %v1467_v32 = vadd.f32 -0.074975304, %v1466_v35  ;;  %vm1479_vm10 = vcmp.gt.f32.partialorder %v3018_v50, %v3006_v14 }
 0x11e   : > { %v1299_v33 = vsel %vm1297_vm13, %v1298_v39, %v1296_v15  ;;  %v1356_v40 = vsel %vm1344_vm2, 2.3561945, %v2498_v34  ;;  %v1511_v47 = vmul.f32 %v1510_v25, %v3179_v3  ;;  %vm1359_vm13 = vmand %vm1357_vm0, %vm1358_vm7  ;;  %v1133_v45 = vor.u32 %v1132_v20, %v1131_v46 }
 0x11f   : > { %v1303_v48 = vsel %vm1302_vm9, %v3079_v54, %v1299_v33  ;;  %v1346_v51 = vsel %vm1344_vm2, %v1345_v23, %v1343_v24  ;;  %v1468_v18 = vmul.f32 %v1467_v32, %v3109_v31  ;;  %v1180_v54 = vor.u32 %v1179_v41, %v1178_v26 }
 0x120   : > { %v1307_v52 = vsel %vm3197_vm8, nan, %v1303_v48  ;;  %v1350_v7 = vsel %vm1349_vm11, %v3091_v38, %v1346_v51  ;;  %v1512_v19 = vadd.f32 0.04247222, %v1511_v47  ;;  %v1181_v57 = vmul.f32 2.0, %v1133_v45 }
 0x121   : > { %v1313_v27 = vsel %vm1312_vm4, %v3084_v56, %v1307_v52  ;;  %v1354_v21 = vsel %vm3204_vm3, nan, %v1350_v7  ;;  %v1469_v43 = vadd.f32 0.1064488, %v1468_v18  ;;  %v1182_v22 = vmul.f32 2.0, %v1180_v54 }
 0x122   : > { %v1314_v8 = vand.u32 2147483647, %v1313_v27  ;;  %v1360_v53 = vsel %vm1359_vm13, %v1356_v40, %v1354_v21  ;;  %v1513_v58 = vmul.f32 %v1512_v19, %v3179_v3  ;;  %v1183_v55 = vmul.f32 %v1181_v57, %v1181_v57 }
 0x123   : > { %v1361_v20 = vand.u32 2147483647, %v1360_v53  ;;  %v1470_v29 = vmul.f32 %v1469_v43, %v3109_v31  ;;  %v1184_v9 = vmul.f32 %v1182_v22, %v1182_v22  ;;  %v985_v40 = vlaneseq }
 0x124   : > { %v1316_v44 = vor.u32 %v1315_v36, %v1314_v8  ;;  %v1514_v63 = vadd.f32 -0.074975304, %v1513_v58  ;;  %vm1485_vm1 = vcmp.lt.s32.totalorder %v2988_v2, 0  ;;  %v993_v48 = vstv %s1924_s19 }
 0x125   : > { %v1363_v38 = vor.u32 %v1362_v6, %v1361_v20  ;;  %v1471_v0 = vadd.f32 -0.14207031, %v1470_v29  ;;  %vm1489_vm2 = vcmp.ne.f32.partialorder %v2988_v2, %v2988_v2  ;;  %vm1490_vm0 = vcmp.ne.f32.partialorder %v3014_v37, %v3014_v37 }
 0x126   : > { %v1364_v41 = vmul.f32 2.0, %v1316_v44  ;;  %v1515_v56 = vmul.f32 %v1514_v63, %v3179_v3  ;;  %vm1482_vm9 = vcmp.lt.f32.partialorder %v2988_v2, 0.0  ;;  %vm1495_vm6 = vcmp.eq.s32.totalorder %v3006_v14, inf  ;;  %vm1491_vm14 = vmor %vm1489_vm2, %vm1490_vm0 }
 0x127   : > { %v1365_v61 = vmul.f32 2.0, %v1363_v38  ;;  %v1472_v49 = vmul.f32 %v1471_v0, %v3109_v31  ;;  %vm1496_vm12 = vcmp.eq.s32.totalorder %v3018_v50, inf  ;;  %v1486_v6 = vsel %vm1485_vm1, 3.1415927, %v2497_v28 }
 0x128   : > { %v1366_v62 = vmul.f32 %v1364_v41, %v1364_v41  ;;  %v1516_v60 = vadd.f32 0.1064488, %v1515_v56  ;;  %vm1487_vm11 = vcmp.eq.f32.partialorder %v3014_v37, 0.0  ;;  %v986_v45 = vshrl.u32 %v985_v40, 7  ;;  %vm1497_vm15 = vmand %vm1495_vm6, %vm1496_vm12 }
 0x129   : > { %v1367_v1 = vmul.f32 %v1365_v61, %v1365_v61  ;;  %v1473_v12 = vadd.f32 0.19993454, %v1472_v49  ;;  %v1494_v7 = vsel %vm1482_vm9, 2.3561945, %v2498_v34  ;;  %vm1526_vm5 = vcmp.gt.f32.partialorder %v3035_v16, %v3030_v5  ;;  %v1002_v61 = vld [vmem:[%s2826_s11] sm:$0xff] }
 0x12a   : > { %v1368_v13 = vmul.f32 0.8, %v1366_v62  ;;  %v1517_v4 = vmul.f32 %v1516_v60, %v3179_v3  ;;  %v994_v2 = vadd.s32 %v993_v48, %v986_v45  ;;  %v1500_v50 = vand.u32 2147483648, %v3014_v37 }
 0x12b   : > { %v1369_v15 = vmul.f32 0.8, %v1367_v1  ;;  %v1474_v35 = vmul.f32 %v1473_v12, %v3109_v31  ;;  %vm1532_vm7 = vcmp.lt.s32.totalorder %v3002_v11, 0  ;;  %vm1529_vm8 = vcmp.lt.f32.partialorder %v3002_v11, 0.0 }
 0x12c   : > { %v3244_v46 = vadd.f32 %v1368_v13, %v1183_v55  ;;  %v1518_v39 = vadd.f32 -0.14207031, %v1517_v4  ;;  %vm1536_vm3 = vcmp.ne.f32.partialorder %v3002_v11, %v3002_v11  ;;  %vm1537_vm4 = vcmp.ne.f32.partialorder %v3026_v59, %v3026_v59  ;;  %v1003_v4 = vld [vmem:[%s2826_s11 + $0x8] sm:$0xff] }
 0x12d   : > { %v3246_v42 = vadd.f32 %v1369_v15, %v1184_v9  ;;  %v1475_v24 = vadd.f32 -0.33333147, %v1474_v35  ;;  %vm1542_vm13 = vcmp.eq.s32.totalorder %v3030_v5, inf  ;;  %v1533_v37 = vsel %vm1532_vm7, 3.1415927, %v2497_v28  ;;  %vm1538_vm2 = vmor %vm1536_vm3, %vm1537_vm4  ;;  %v1558_v35 = vld [vmem:[#allocation5 + $0x8] sm:$0xff] }
 0x12e   : > { %v1519_v25 = vmul.f32 %v1518_v39, %v3179_v3  ;;  %vm1534_vm1 = vcmp.eq.f32.partialorder %v3026_v59, 0.0  ;;  %v987_v8 = vadd.s32 8, %v986_v45  ;;  %v989_v58 = vand.u32 127, %v985_v40 }
 0x12f   : > { %v1476_v26 = vmul.f32 %v1475_v24, %v3109_v31  ;;  %v996_v20 = vmul.u32 128, %v994_v2  ;;  %v1541_v5 = vsel %vm1529_vm8, 2.3561945, %v2498_v34  ;;  %v1547_v28 = vand.u32 2147483648, %v3026_v59  ;;  %v1557_v34 = vld [vmem:[#allocation5] sm:$0xff] }
 0x130   : > { %v1520_v23 = vadd.f32 0.19993454, %v1519_v25  ;;  %v995_v63 = vadd.s32 %v993_v48, %v987_v8 }
 0x131   : > { %v1477_v30 = vmul.f32 %v1476_v26, %v3099_v17  ;;  %v998_v0 = vadd.s32 %v996_v20, %v989_v58 }
 0x132   : > { %v1521_v32 = vmul.f32 %v1520_v23, %v3179_v3  ;;  %v997_v55 = vmul.u32 128, %v995_v63 }
 0x133   : > { %v1478_v33 = vadd.f32 %v1477_v30, %v3099_v17 }
 0x134   : > { %v1522_v36 = vadd.f32 -0.33333147, %v1521_v32  ;;  %v999_v1 = vadd.s32 %v997_v55, %v989_v58 }
 0x135   : > { %v1480_v47 = vsub.f32 1.5707964, %v1478_v33 }
 0x136   : > { %v1523_v31 = vmul.f32 %v1522_v36, %v3179_v3  ;;  %vm1001_vm6 = vcmp.lt.s32.totalorder %v999_v1, 2304 }
 0x137   : > { %v1481_v51 = vsel %vm1479_vm10, %v1480_v47, %v1478_v33  ;;  %vm1543_vm10 = vcmp.eq.s32.totalorder %v3035_v16, inf }
 0x138   : > { %v1483_v17 = vsub.f32 3.1415927, %v1481_v51  ;;  %v1524_v18 = vmul.f32 %v1523_v31, %v3163_v10  ;;  %vm1544_vm0 = vmand %vm1542_vm13, %vm1543_vm10 }
 0x13a   : > { %v1484_v52 = vsel %vm1482_vm9, %v1483_v17, %v1481_v51  ;;  %v1525_v3 = vadd.f32 %v1524_v18, %v3163_v10  ;;  %vm1000_vm9 = vcmp.lt.s32.totalorder %v998_v0, 2304 }
 0x13b   : > { %v1488_v19 = vsel %vm1487_vm11, %v1486_v6, %v1484_v52 }
 0x13c   : > { %v1492_v14 = vsel %vm1491_vm14, nan, %v1488_v19  ;;  %v1527_v54 = vsub.f32 1.5707964, %v1525_v3 }
 0x13d   : > { %v1498_v27 = vsel %vm1497_vm15, %v1494_v7, %v1492_v14 }
 0x13e   : > { %v1499_v10 = vand.u32 2147483647, %v1498_v27  ;;  %v1528_v21 = vsel %vm1526_vm5, %v1527_v54, %v1525_v3 }
 0x13f   : > { %v1530_v43 = vsub.f32 3.1415927, %v1528_v21 }
 0x140   : > { %v1501_v53 = vor.u32 %v1500_v50, %v1499_v10 }
 0x141   : > { %v1531_v29 = vsel %vm1529_vm8, %v1530_v43, %v1528_v21 }
 0x142   : > { %v1535_v16 = vsel %vm1534_vm1, %v1533_v37, %v1531_v29  ;;  %v1549_v57 = vmul.f32 2.0, %v1501_v53 }
 0x143   : > { %v1539_v44 = vsel %vm1538_vm2, nan, %v1535_v16 }
 0x144   : > { %v1545_v22 = vsel %vm1544_vm0, %v1541_v5, %v1539_v44  ;;  %v1551_v38 = vmul.f32 %v1549_v57, %v1549_v57 }
 0x145   : > { %v1546_v41 = vand.u32 2147483647, %v1545_v22 }
 0x146   : > { %v1553_v56 = vmul.f32 0.5, %v1551_v38 }
 0x147   : > { %v1548_v49 = vor.u32 %v1547_v28, %v1546_v41 }
 0x148   : > { %v1555_v62 = vadd.f32 %v1553_v56, %v3244_v46 }
 0x149   : > { %v1550_v11 = vmul.f32 2.0, %v1548_v49 }
 0x14a   : > { %v1559_v60 = vmul.f32 %v1555_v62, %v1002_v61 }
 0x14b   : > { %v1552_v9 = vmul.f32 %v1550_v11, %v1550_v11 }
 0x14c   : > { %v1561_v59 = vsel %vm1000_vm9, %v1559_v60, 0.0 }
 0x14d   : > { %v1554_v12 = vmul.f32 0.5, %v1552_v9  ;;  %v1563_v13 = vadd.f32 %v1561_v59, %v1557_v34 }
 0x14f   : > { %v1556_v15 = vadd.f32 %v1554_v12, %v3246_v42  ;;  %1565 = vst [vmem:[#allocation5] sm:$0xff] %v1563_v13 }
 0x151   : > { %v1560_v39 = vmul.f32 %v1556_v15, %v1003_v4 }
 0x153   : > { %v1562_v46 = vsel %vm1001_vm6, %v1560_v39, 0.0 }
 0x154   : > { %v1564_v24 = vadd.f32 %v1562_v46, %v1558_v35 }
 0x156   : > { %1566 = vst [vmem:[#allocation5 + $0x8] sm:$0xff] %v1564_v24 }
 0x157   : > { %2249 = shalt.err (!%p2246_p2)
}
 0x158   : > { %s2500_s17 = smov 128   ;;  %s2501_s29 = smov 8  }
 0x159   : > { %1957 = dma.vmem_to_hbm [thread:$0]  (%p3295_p10), %s1577_s18, 256, %s3332_s7, [#allocation6], %s2500_s17, %s2500_s17, %s2501_s29  }
 0x15a   : > { %2377 = dma.done.wait (%p3295_p10), [#allocation6], 256  }
 0x15b   : > { %2379 = vsyncadd (%p3295_p10), [#allocation6], 4294967040 }
 0x15c PF: > { %s18_s28 = sadd.s32 1, %s2398_s28   ;;  %s3358_s24 = smov %s2386_s25 }
 0x15d   : > { %p15_p3 = scmp.ge.s32.totalorder %s18_s28, 4   ;;  %s3359_s25 = smov %s2587_s13 }
 0x15e   : > { %s3360_s26 = smov %s2394_s27  ;;  %s3361_s27 = smov %s3363_s30 }
 0x15f   :  { %17 = sbr.rel (!%p15_p3) target bundleno = 3 (0x3), region = 368 }
 0x164   :  { %1592 = vsyncpa [#allocation6], 1 }
 0x165   :  { %1594 = vsyncpa [#allocation6 + $0x1], 1 }

</bundles_post_ra>
